<compile_context>
chip_gen: v7x
topology: tpu7x:2x2x1
jax: 0.10.0
libtpu: 0.0.40
codegen_flags: <defaults>
</compile_context>

<pallas_src>
import jax
import jax.numpy as jnp
from jax.experimental import pallas as pl
from jax.experimental.pallas import tpu as pltpu


_PART_SHAPE = (8, 128)  # one lane-dense f32 vreg per per-tile loss partial


def _sae_kernel(x_ref, w_enc_ref, w_dec_ref, b_enc_ref, b_dec_ref,
                recon_ref, acts_ref, l2_ref, l1_ref):
    x = x_ref[...]                                               # [TB, D_act] storage dtype
    x_mxu = x if x.dtype == w_enc_ref.dtype else x.astype(w_enc_ref.dtype)

    # ----- encoder: relu(x @ W_enc + b_enc'), b_enc' = b_enc - b_dec @ W_enc -----
    pre = jnp.dot(x_mxu, w_enc_ref[...], preferred_element_type=jnp.float32)
    acts = jnp.maximum(pre + b_enc_ref[...], 0.0)                # [TB, D_dict] f32

    # ----- decoder: acts @ W_dec + b_dec (acts cast to MXU dtype exactly once) ---
    acts_lo = acts if acts.dtype == w_dec_ref.dtype else acts.astype(w_dec_ref.dtype)
    recon = jnp.dot(acts_lo, w_dec_ref[...],
                    preferred_element_type=jnp.float32) + b_dec_ref[...]

    acts_ref[...] = acts_lo if acts_lo.dtype == acts_ref.dtype else acts.astype(acts_ref.dtype)
    recon_ref[...] = recon.astype(recon_ref.dtype)

    # ----- per-tile loss partials (final reduction done in the wrapper) ----------
    diff = recon - x.astype(jnp.float32)
    l2_ref[...] = jnp.full((1,) + _PART_SHAPE, jnp.sum(diff * diff), jnp.float32)
    l1_ref[...] = jnp.full((1,) + _PART_SHAPE, jnp.sum(jnp.abs(acts)), jnp.float32)

    # TODO(synk): self.neuron_activity accumulation and step_counter are stateful
    # training-side bookkeeping, not part of the returned tensors; not modeled here.


def _vmem_budget_bytes():
    """~85% of this generation's VMEM (v5e/v6e ~109 MiB, v7x ~54 MiB)."""
    cap = 64 << 20  # conservative fallback (v7x per-core physical VMEM)
    try:
        info = pltpu.get_tpu_info()
        cap = int(getattr(info, "vmem_capacity_bytes", cap)) or cap
    except Exception:
        pass
    return int(cap * 0.85)


def _select_block_b(batch, d_act, d_dict, x_itemsize, acts_itemsize,
                    resident_bytes, vmem_budget, requested=None):
    """Batch tile: large (fills MXU M dim), sublane-pack aligned, VMEM-budgeted,
    and keeping grid_b >= 2 so v7x's two TensorCores both get work."""
    sub = max(8, 32 // max(x_itemsize, 1))   # f32 -> 8, bf16 -> 16, int8 -> 32
    if requested is not None:
        if batch % requested:
            raise ValueError(f"block_b={requested} must divide batch={batch}")
        if requested != batch and requested % sub:
            raise ValueError(f"block_b must be a multiple of {sub} (or == batch)")
        return requested

    def tile_bytes(tb):
        # double-buffered pipelined tiles (x, recon, acts) ...
        pipelined = 2 * tb * (2 * d_act * x_itemsize + d_dict * acts_itemsize)
        # ... plus the f32 in-kernel intermediates (pre/acts/acts_lo, x_f32/recon/diff)
        f32_scratch = tb * (3 * d_dict + 4 * d_act) * 4
        parts = 2 * 2 * 8 * 128 * 4
        return pipelined + f32_scratch + parts

    cands = [c for c in (1024, 512, 256, 128, 64, 32, 16, 8)
             if c % sub == 0 and batch % c == 0]
    for c in cands:                              # prefer >= 2 grid steps (megacore)
        if batch // c >= 2 and resident_bytes + tile_bytes(c) <= vmem_budget:
            return c
    for c in cands:                              # else: largest tile that fits
        if resident_bytes + tile_bytes(c) <= vmem_budget:
            return c
    return cands[-1] if cands else batch         # tiny / odd batch: single tile


def relu_autoencoder_forward(x, w_enc, w_dec, b_enc, b_dec, l1_coeff, *,
                             block_b=None, acts_dtype=None, mxu_dtype=None):
    """Returns (loss, x_reconstruct, acts, l2_loss, l1_loss) like the torch module."""
    B, D_act = x.shape
    assert w_enc.shape[0] == D_act
    D_dict = w_enc.shape[1]
    assert w_dec.shape == (D_dict, D_act)
    acts_dtype = x.dtype if acts_dtype is None else jnp.dtype(acts_dtype)

    if mxu_dtype is not None:
        # Opt-in low-precision MXU (e.g. bf16 on v5e where peak is bf16-only):
        # cast the weights once here; the x tile / acts are cast in-kernel.
        w_enc = w_enc.astype(mxu_dtype)
        w_dec = w_dec.astype(mxu_dtype)

    # Fold the decoder-bias centering into the encoder bias (once, in f32):
    #   relu((x - b_dec) @ W_enc + b_enc) == relu(x @ W_enc + (b_enc - b_dec @ W_enc))
    b_enc_eff = (b_enc.astype(jnp.float32)
                 - jnp.dot(b_dec.astype(jnp.float32), w_enc.astype(jnp.float32),
                           precision=jax.lax.Precision.HIGHEST)).reshape(1, D_dict)
    b_dec2 = b_dec.astype(jnp.float32).reshape(1, D_act)

    itemsize = lambda dt: jnp.dtype(dt).itemsize
    resident_bytes = (w_enc.size * itemsize(w_enc.dtype)
                      + w_dec.size * itemsize(w_dec.dtype)
                      + (D_dict + D_act) * 4)
    budget = _vmem_budget_bytes()
    tb = _select_block_b(B, D_act, D_dict, itemsize(x.dtype), itemsize(acts_dtype),
                         resident_bytes, budget, block_b)
    grid_b = B // tb

    x_spec = pl.BlockSpec((tb, D_act), lambda i: (i, 0))
    resident_shapes = [(D_act, D_dict), (D_dict, D_act), (1, D_dict), (1, D_act)]
    out_specs = (
        pl.BlockSpec((tb, D_act), lambda i: (i, 0)),               # x_reconstruct
        pl.BlockSpec((tb, D_dict), lambda i: (i, 0)),              # acts
        pl.BlockSpec((1,) + _PART_SHAPE, lambda i: (i, 0, 0)),     # l2 partials
        pl.BlockSpec((1,) + _PART_SHAPE, lambda i: (i, 0, 0)),     # l1 partials
    )
    out_shape = (
        jax.ShapeDtypeStruct((B, D_act), x.dtype),
        jax.ShapeDtypeStruct((B, D_dict), acts_dtype),
        jax.ShapeDtypeStruct((grid_b,) + _PART_SHAPE, jnp.float32),
        jax.ShapeDtypeStruct((grid_b,) + _PART_SHAPE, jnp.float32),
    )

    def _build(single_buffer_residents):
        def _const_spec(shape):
            if single_buffer_residents:
                return pl.BlockSpec(shape, lambda i: (0, 0),
                                    pipeline_mode=pl.Buffered(1))
            return pl.BlockSpec(shape, lambda i: (0, 0))

        return pl.pallas_call(
            _sae_kernel,
            grid=(grid_b,),
            in_specs=[x_spec] + [_const_spec(s) for s in resident_shapes],
            out_specs=out_specs,
            out_shape=out_shape,
            compiler_params=pltpu.CompilerParams(
                dimension_semantics=("parallel",),
                vmem_limit_bytes=budget,
            ),
        )

    args = (x, w_enc, w_dec, b_enc_eff, b_dec2)
    try:
        recon, acts, l2_parts, l1_parts = _build(True)(*args)
    except Exception:
        # pipeline_mode=pl.Buffered(1) unsupported on this jax version: residents
        # fall back to the default (double-buffered) pipeline handling.
        recon, acts, l2_parts, l1_parts = _build(False)(*args)

    # Tiny final reductions (grid_b scalars each) + l1_coeff scaling in JAX.
    l2_loss = jnp.sum(l2_parts[:, 0, 0]) / B                      # mean over batch
    l1_loss = jnp.asarray(l1_coeff, jnp.float32) * jnp.sum(l1_parts[:, 0, 0])
    loss = l2_loss + l1_loss
    return loss, recon, acts, l2_loss, l1_loss


def _kaiming_uniform(key, shape):
    # torch.nn.init.kaiming_uniform_ (a=0, fan_in = shape[1] for 2-D weights)
    bound = (6.0 / shape[1]) ** 0.5
    return jax.random.uniform(key, shape, jnp.float32, -bound, bound)


if __name__ == "__main__":
    cfg = {"activation_dim": 128, "dict_dim": 256, "l1_coeff": 1e-3}
    B = 256

    key = jax.random.PRNGKey(0)
    k_x, k_enc, k_dec, k_be, k_bd = jax.random.split(key, 5)

    D_act, D_dict = cfg["activation_dim"], cfg["dict_dim"]

    W_enc = _kaiming_uniform(k_enc, (D_act, D_dict))
    W_dec = _kaiming_uniform(k_dec, (D_dict, D_act))
    W_dec = W_dec / jnp.linalg.norm(W_dec, axis=-1, keepdims=True)  # unit-norm rows
    # torch inits the biases to zero; use small non-zero values here so the
    # decoder-bias folding path is actually exercised by the correctness check.
    b_enc = 0.05 * jax.random.normal(k_be, (D_dict,), jnp.float32)
    b_dec = 0.10 * jax.random.normal(k_bd, (D_act,), jnp.float32)
    x = jax.random.normal(k_x, (B, D_act), jnp.float32)

    # ---------------- f32 path (auto tile: tb=128 -> 2 parallel grid steps) ------
    loss, recon, acts, l2_loss, l1_loss = relu_autoencoder_forward(
        x, W_enc, W_dec, b_enc, b_dec, cfg["l1_coeff"])
    jax.block_until_ready((loss, recon, acts, l2_loss, l1_loss))

    hi = jax.lax.Precision.HIGHEST
    x_cent = x - b_dec
    acts_ref = jnp.maximum(jnp.dot(x_cent, W_enc, precision=hi) + b_enc, 0.0)
    recon_ref = jnp.dot(acts_ref, W_dec, precision=hi) + b_dec
    l2_ref = jnp.mean(jnp.sum((recon_ref - x) ** 2, axis=-1))
    l1_ref = cfg["l1_coeff"] * jnp.sum(jnp.abs(acts_ref))
    loss_ref = l2_ref + l1_ref

    assert jnp.allclose(recon, recon_ref, atol=5e-4, rtol=1e-3), "recon mismatch"
    assert jnp.allclose(acts, acts_ref, atol=5e-4, rtol=1e-3), "acts mismatch"
    assert jnp.allclose(l2_loss, l2_ref, atol=1e-2, rtol=1e-3), "l2 mismatch"
    assert jnp.allclose(l1_loss, l1_ref, atol=1e-2, rtol=1e-3), "l1 mismatch"
    assert jnp.allclose(loss, loss_ref, atol=1e-2, rtol=1e-3), "loss mismatch"

    # ------ bf16 path: bf16 x / weights / acts, f32 losses (tb=128, 2 steps) -----
    xb = x.astype(jnp.bfloat16)
    Web = W_enc.astype(jnp.bfloat16)
    Wdb = W_dec.astype(jnp.bfloat16)
    loss_b, recon_b, acts_b, l2_b, l1_b = relu_autoencoder_forward(
        xb, Web, Wdb, b_enc, b_dec, cfg["l1_coeff"])
    jax.block_until_ready((loss_b, recon_b, acts_b, l2_b, l1_b))
    assert recon_b.dtype == jnp.bfloat16 and acts_b.dtype == jnp.bfloat16

    # reference mirroring the kernel's dtype strategy (bf16 MXU, f32 elsewhere)
    b_enc_eff_rb = b_enc - jnp.dot(b_dec, Web.astype(jnp.float32), precision=hi)
    pre_rb = jnp.dot(xb, Web, preferred_element_type=jnp.float32) + b_enc_eff_rb
    acts_rb = jnp.maximum(pre_rb, 0.0)
    recon_rb = jnp.dot(acts_rb.astype(jnp.bfloat16), Wdb,
                       preferred_element_type=jnp.float32) + b_dec
    l2_rb = jnp.mean(jnp.sum((recon_rb - xb.astype(jnp.float32)) ** 2, axis=-1))
    l1_rb = cfg["l1_coeff"] * jnp.sum(jnp.abs(acts_rb))
    assert jnp.allclose(l2_b, l2_rb, atol=2e-2, rtol=2e-2), "bf16 l2 mismatch"
    assert jnp.allclose(l1_b, l1_rb, atol=2e-2, rtol=2e-2), "bf16 l1 mismatch"
    assert jnp.allclose(loss_b, l2_rb + l1_rb, atol=2e-2, rtol=2e-2), "bf16 loss mismatch"

    print("KERNEL_OK")
</pallas_src>

<mosaic_0001>
module attributes {stable_mosaic.version = 11 : i64} {
  func.func @_sae_kernel(%arg0: i32, %arg1: memref<128x128xf32, #tpu.memory_space<vmem>>, %arg2: memref<128x256xf32, #tpu.memory_space<vmem>>, %arg3: memref<256x128xf32, #tpu.memory_space<vmem>>, %arg4: memref<1x256xf32, #tpu.memory_space<vmem>>, %arg5: memref<1x128xf32, #tpu.memory_space<vmem>>, %arg6: memref<128x128xf32, #tpu.memory_space<vmem>>, %arg7: memref<128x256xf32, #tpu.memory_space<vmem>>, %arg8: memref<1x8x128xf32, #tpu.memory_space<vmem>>, %arg9: memref<1x8x128xf32, #tpu.memory_space<vmem>>) attributes {dimension_semantics = [#tpu.dimension_semantics<parallel>], iteration_bounds = array<i64: 2>, scalar_prefetch = 0 : i64, scratch_operands = 0 : i64, tpu.core_type = #tpu.core_type<tc>, window_params = [{transform_indices = @transform_0, window_bounds = array<i64: 128, 128>}, {pipeline_mode = #tpu.pipeline_mode<synchronous>, transform_indices = @transform_1, window_bounds = array<i64: 128, 256>}, {pipeline_mode = #tpu.pipeline_mode<synchronous>, transform_indices = @transform_2, window_bounds = array<i64: 256, 128>}, {pipeline_mode = #tpu.pipeline_mode<synchronous>, transform_indices = @transform_3, window_bounds = array<i64: 1, 256>}, {pipeline_mode = #tpu.pipeline_mode<synchronous>, transform_indices = @transform_4, window_bounds = array<i64: 1, 128>}, {transform_indices = @transform_5, window_bounds = array<i64: 128, 128>}, {transform_indices = @transform_6, window_bounds = array<i64: 128, 256>}, {transform_indices = @transform_7, window_bounds = array<i64: 1, 8, 128>}, {transform_indices = @transform_8, window_bounds = array<i64: 1, 8, 128>}]} {
    %c0 = arith.constant 0 : index
    %c0_0 = arith.constant 0 : index
    %0 = vector.load %arg1[%c0, %c0_0] : memref<128x128xf32, #tpu.memory_space<vmem>>, vector<128x128xf32>
    %c0_1 = arith.constant 0 : index
    %c0_2 = arith.constant 0 : index
    %1 = vector.load %arg2[%c0_1, %c0_2] : memref<128x256xf32, #tpu.memory_space<vmem>>, vector<128x256xf32>
    %cst = arith.constant dense<0.000000e+00> : vector<128x256xf32>
    %2 = tpu.matmul %0, %1, %cst {dimension_numbers = #tpu.dot_dimension_numbers<[1], [0], [0], [1], [0, 0, 1, 1], [], []>} : vector<128x128xf32>, vector<128x256xf32>, vector<128x256xf32> -> vector<128x256xf32>
    %c0_3 = arith.constant 0 : index
    %c0_4 = arith.constant 0 : index
    %3 = vector.load %arg4[%c0_3, %c0_4] : memref<1x256xf32, #tpu.memory_space<vmem>>, vector<1x256xf32>
    %4 = vector.broadcast %3 : vector<1x256xf32> to vector<128x256xf32>
    %5 = arith.addf %2, %4 : vector<128x256xf32>
    %cst_5 = arith.constant 0.000000e+00 : f32
    %6 = vector.broadcast %cst_5 : f32 to vector<128x256xf32>
    %7 = arith.maximumf %5, %6 : vector<128x256xf32>
    %c0_6 = arith.constant 0 : index
    %c0_7 = arith.constant 0 : index
    %8 = vector.load %arg3[%c0_6, %c0_7] : memref<256x128xf32, #tpu.memory_space<vmem>>, vector<256x128xf32>
    %cst_8 = arith.constant dense<0.000000e+00> : vector<128x128xf32>
    %9 = tpu.matmul %7, %8, %cst_8 {dimension_numbers = #tpu.dot_dimension_numbers<[1], [0], [0], [1], [0, 0, 1, 1], [], []>} : vector<128x256xf32>, vector<256x128xf32>, vector<128x128xf32> -> vector<128x128xf32>
    %c0_9 = arith.constant 0 : index
    %c0_10 = arith.constant 0 : index
    %10 = vector.load %arg5[%c0_9, %c0_10] : memref<1x128xf32, #tpu.memory_space<vmem>>, vector<1x128xf32>
    %11 = vector.broadcast %10 : vector<1x128xf32> to vector<128x128xf32>
    %12 = arith.addf %9, %11 : vector<128x128xf32>
    %c0_11 = arith.constant 0 : index
    %c0_12 = arith.constant 0 : index
    %13 = vector.load %arg7[%c0_11, %c0_12] : memref<128x256xf32, #tpu.memory_space<vmem>>, vector<128x256xf32>
    tpu.vector_store %arg7[%c0_11, %c0_12], %7 {strides = array<i32>} : memref<128x256xf32, #tpu.memory_space<vmem>>, vector<128x256xf32>,
    %c0_13 = arith.constant 0 : index
    %c0_14 = arith.constant 0 : index
    %14 = vector.load %arg6[%c0_13, %c0_14] : memref<128x128xf32, #tpu.memory_space<vmem>>, vector<128x128xf32>
    tpu.vector_store %arg6[%c0_13, %c0_14], %12 {strides = array<i32>} : memref<128x128xf32, #tpu.memory_space<vmem>>, vector<128x128xf32>,
    %15 = arith.subf %12, %0 : vector<128x128xf32>
    %16 = arith.mulf %15, %15 : vector<128x128xf32>
    %17 = vector.shape_cast %16 : vector<128x128xf32> to vector<1x128x128xf32>
    %cst_15 = arith.constant dense<0.000000e+00> : vector<1xf32>
    %18 = vector.multi_reduction <add>, %17, %cst_15 [1, 2] : vector<1x128x128xf32> to vector<1xf32>
    %19 = vector.shape_cast %18 : vector<1xf32> to vector<1x1x1xf32>
    %20 = vector.extract %19[0, 0, 0] : f32 from vector<1x1x1xf32>
    %21 = vector.broadcast %20 : f32 to vector<1x8x128xf32>
    %c0_16 = arith.constant 0 : index
    %c0_17 = arith.constant 0 : index
    %c0_18 = arith.constant 0 : index
    %22 = vector.load %arg8[%c0_16, %c0_17, %c0_18] : memref<1x8x128xf32, #tpu.memory_space<vmem>>, vector<1x8x128xf32>
    tpu.vector_store %arg8[%c0_16, %c0_17, %c0_18], %21 {strides = array<i32>} : memref<1x8x128xf32, #tpu.memory_space<vmem>>, vector<1x8x128xf32>,
    %23 = math.absf %7 : vector<128x256xf32>
    %24 = vector.shape_cast %23 : vector<128x256xf32> to vector<1x128x256xf32>
    %cst_19 = arith.constant dense<0.000000e+00> : vector<1xf32>
    %25 = vector.multi_reduction <add>, %24, %cst_19 [1, 2] : vector<1x128x256xf32> to vector<1xf32>
    %26 = vector.shape_cast %25 : vector<1xf32> to vector<1x1x1xf32>
    %27 = vector.extract %26[0, 0, 0] : f32 from vector<1x1x1xf32>
    %28 = vector.broadcast %27 : f32 to vector<1x8x128xf32>
    %c0_20 = arith.constant 0 : index
    %c0_21 = arith.constant 0 : index
    %c0_22 = arith.constant 0 : index
    %29 = vector.load %arg9[%c0_20, %c0_21, %c0_22] : memref<1x8x128xf32, #tpu.memory_space<vmem>>, vector<1x8x128xf32>
    tpu.vector_store %arg9[%c0_20, %c0_21, %c0_22], %28 {strides = array<i32>} : memref<1x8x128xf32, #tpu.memory_space<vmem>>, vector<1x8x128xf32>,
    return
  }
  func.func @transform_0(%arg0: i32) -> (i32, i32) {
    %c0_i32 = arith.constant 0 : i32
    %c0_i32_0 = arith.constant 0 : i32
    return %arg0, %c0_i32 : i32, i32
  }
  func.func @transform_1(%arg0: i32) -> (i32, i32) {
    %c0_i32 = arith.constant 0 : i32
    %c0_i32_0 = arith.constant 0 : i32
    %c0_i32_1 = arith.constant 0 : i32
    return %c0_i32, %c0_i32_0 : i32, i32
  }
  func.func @transform_2(%arg0: i32) -> (i32, i32) {
    %c0_i32 = arith.constant 0 : i32
    %c0_i32_0 = arith.constant 0 : i32
    %c0_i32_1 = arith.constant 0 : i32
    return %c0_i32, %c0_i32_0 : i32, i32
  }
  func.func @transform_3(%arg0: i32) -> (i32, i32) {
    %c0_i32 = arith.constant 0 : i32
    %c0_i32_0 = arith.constant 0 : i32
    %c0_i32_1 = arith.constant 0 : i32
    return %c0_i32, %c0_i32_0 : i32, i32
  }
  func.func @transform_4(%arg0: i32) -> (i32, i32) {
    %c0_i32 = arith.constant 0 : i32
    %c0_i32_0 = arith.constant 0 : i32
    %c0_i32_1 = arith.constant 0 : i32
    return %c0_i32, %c0_i32_0 : i32, i32
  }
  func.func @transform_5(%arg0: i32) -> (i32, i32) {
    %c0_i32 = arith.constant 0 : i32
    %c0_i32_0 = arith.constant 0 : i32
    return %arg0, %c0_i32 : i32, i32
  }
  func.func @transform_6(%arg0: i32) -> (i32, i32) {
    %c0_i32 = arith.constant 0 : i32
    %c0_i32_0 = arith.constant 0 : i32
    return %arg0, %c0_i32 : i32, i32
  }
  func.func @transform_7(%arg0: i32) -> (i32, i32, i32) {
    %c0_i32 = arith.constant 0 : i32
    %c0_i32_0 = arith.constant 0 : i32
    %c0_i32_1 = arith.constant 0 : i32
    return %arg0, %c0_i32, %c0_i32_0 : i32, i32, i32
  }
  func.func @transform_8(%arg0: i32) -> (i32, i32, i32) {
    %c0_i32 = arith.constant 0 : i32
    %c0_i32_0 = arith.constant 0 : i32
    %c0_i32_1 = arith.constant 0 : i32
    return %arg0, %c0_i32, %c0_i32_0 : i32, i32, i32
  }
}

module attributes {stable_mosaic.version = 11 : i64} {
  func.func @_sae_kernel(%arg0: i32, %arg1: memref<128x128xf32, #tpu.memory_space<vmem>>, %arg2: memref<128x256xf32, #tpu.memory_space<vmem>>, %arg3: memref<256x128xf32, #tpu.memory_space<vmem>>, %arg4: memref<1x256xf32, #tpu.memory_space<vmem>>, %arg5: memref<1x128xf32, #tpu.memory_space<vmem>>, %arg6: memref<128x128xf32, #tpu.memory_space<vmem>>, %arg7: memref<128x256xf32, #tpu.memory_space<vmem>>, %arg8: memref<1x8x128xf32, #tpu.memory_space<vmem>>, %arg9: memref<1x8x128xf32, #tpu.memory_space<vmem>>) attributes {dimension_semantics = [#tpu.dimension_semantics<parallel>], iteration_bounds = array<i64: 2>, scalar_prefetch = 0 : i64, scratch_operands = 0 : i64, tpu.core_type = #tpu.core_type<tc>, window_params = [{transform_indices = @transform_0, window_bounds = array<i64: 128, 128>}, {pipeline_mode = #tpu.pipeline_mode<synchronous>, transform_indices = @transform_1, window_bounds = array<i64: 128, 256>}, {pipeline_mode = #tpu.pipeline_mode<synchronous>, transform_indices = @transform_2, window_bounds = array<i64: 256, 128>}, {pipeline_mode = #tpu.pipeline_mode<synchronous>, transform_indices = @transform_3, window_bounds = array<i64: 1, 256>}, {pipeline_mode = #tpu.pipeline_mode<synchronous>, transform_indices = @transform_4, window_bounds = array<i64: 1, 128>}, {transform_indices = @transform_5, window_bounds = array<i64: 128, 128>}, {transform_indices = @transform_6, window_bounds = array<i64: 128, 256>}, {transform_indices = @transform_7, window_bounds = array<i64: 1, 8, 128>}, {transform_indices = @transform_8, window_bounds = array<i64: 1, 8, 128>}]} {
    %c0 = arith.constant 0 : index
    %c0_0 = arith.constant 0 : index
    %0 = vector.load %arg1[%c0, %c0_0] : memref<128x128xf32, #tpu.memory_space<vmem>>, vector<128x128xf32>
    %c0_1 = arith.constant 0 : index
    %c0_2 = arith.constant 0 : index
    %1 = vector.load %arg2[%c0_1, %c0_2] : memref<128x256xf32, #tpu.memory_space<vmem>>, vector<128x256xf32>
    %cst = arith.constant dense<0.000000e+00> : vector<128x256xf32>
    %2 = tpu.matmul %0, %1, %cst {dimension_numbers = #tpu.dot_dimension_numbers<[1], [0], [0], [1], [0, 0, 1, 1], [], []>} : vector<128x128xf32>, vector<128x256xf32>, vector<128x256xf32> -> vector<128x256xf32>
    %c0_3 = arith.constant 0 : index
    %c0_4 = arith.constant 0 : index
    %3 = vector.load %arg4[%c0_3, %c0_4] : memref<1x256xf32, #tpu.memory_space<vmem>>, vector<1x256xf32>
    %4 = vector.broadcast %3 : vector<1x256xf32> to vector<128x256xf32>
    %5 = arith.addf %2, %4 : vector<128x256xf32>
    %cst_5 = arith.constant 0.000000e+00 : f32
    %6 = vector.broadcast %cst_5 : f32 to vector<128x256xf32>
    %7 = arith.maximumf %5, %6 : vector<128x256xf32>
    %c0_6 = arith.constant 0 : index
    %c0_7 = arith.constant 0 : index
    %8 = vector.load %arg3[%c0_6, %c0_7] : memref<256x128xf32, #tpu.memory_space<vmem>>, vector<256x128xf32>
    %cst_8 = arith.constant dense<0.000000e+00> : vector<128x128xf32>
    %9 = tpu.matmul %7, %8, %cst_8 {dimension_numbers = #tpu.dot_dimension_numbers<[1], [0], [0], [1], [0, 0, 1, 1], [], []>} : vector<128x256xf32>, vector<256x128xf32>, vector<128x128xf32> -> vector<128x128xf32>
    %c0_9 = arith.constant 0 : index
    %c0_10 = arith.constant 0 : index
    %10 = vector.load %arg5[%c0_9, %c0_10] : memref<1x128xf32, #tpu.memory_space<vmem>>, vector<1x128xf32>
    %11 = vector.broadcast %10 : vector<1x128xf32> to vector<128x128xf32>
    %12 = arith.addf %9, %11 : vector<128x128xf32>
    %c0_11 = arith.constant 0 : index
    %c0_12 = arith.constant 0 : index
    %13 = vector.load %arg7[%c0_11, %c0_12] : memref<128x256xf32, #tpu.memory_space<vmem>>, vector<128x256xf32>
    tpu.vector_store %arg7[%c0_11, %c0_12], %7 {strides = array<i32>} : memref<128x256xf32, #tpu.memory_space<vmem>>, vector<128x256xf32>,
    %c0_13 = arith.constant 0 : index
    %c0_14 = arith.constant 0 : index
    %14 = vector.load %arg6[%c0_13, %c0_14] : memref<128x128xf32, #tpu.memory_space<vmem>>, vector<128x128xf32>
    tpu.vector_store %arg6[%c0_13, %c0_14], %12 {strides = array<i32>} : memref<128x128xf32, #tpu.memory_space<vmem>>, vector<128x128xf32>,
    %15 = arith.subf %12, %0 : vector<128x128xf32>
    %16 = arith.mulf %15, %15 : vector<128x128xf32>
    %17 = vector.shape_cast %16 : vector<128x128xf32> to vector<1x128x128xf32>
    %cst_15 = arith.constant dense<0.000000e+00> : vector<1xf32>
    %18 = vector.multi_reduction <add>, %17, %cst_15 [1, 2] : vector<1x128x128xf32> to vector<1xf32>
    %19 = vector.shape_cast %18 : vector<1xf32> to vector<1x1x1xf32>
    %20 = vector.extract %19[0, 0, 0] : f32 from vector<1x1x1xf32>
    %21 = vector.broadcast %20 : f32 to vector<1x8x128xf32>
    %c0_16 = arith.constant 0 : index
    %c0_17 = arith.constant 0 : index
    %c0_18 = arith.constant 0 : index
    %22 = vector.load %arg8[%c0_16, %c0_17, %c0_18] : memref<1x8x128xf32, #tpu.memory_space<vmem>>, vector<1x8x128xf32>
    tpu.vector_store %arg8[%c0_16, %c0_17, %c0_18], %21 {strides = array<i32>} : memref<1x8x128xf32, #tpu.memory_space<vmem>>, vector<1x8x128xf32>,
    %23 = math.absf %7 : vector<128x256xf32>
    %24 = vector.shape_cast %23 : vector<128x256xf32> to vector<1x128x256xf32>
    %cst_19 = arith.constant dense<0.000000e+00> : vector<1xf32>
    %25 = vector.multi_reduction <add>, %24, %cst_19 [1, 2] : vector<1x128x256xf32> to vector<1xf32>
    %26 = vector.shape_cast %25 : vector<1xf32> to vector<1x1x1xf32>
    %27 = vector.extract %26[0, 0, 0] : f32 from vector<1x1x1xf32>
    %28 = vector.broadcast %27 : f32 to vector<1x8x128xf32>
    %c0_20 = arith.constant 0 : index
    %c0_21 = arith.constant 0 : index
    %c0_22 = arith.constant 0 : index
    %29 = vector.load %arg9[%c0_20, %c0_21, %c0_22] : memref<1x8x128xf32, #tpu.memory_space<vmem>>, vector<1x8x128xf32>
    tpu.vector_store %arg9[%c0_20, %c0_21, %c0_22], %28 {strides = array<i32>} : memref<1x8x128xf32, #tpu.memory_space<vmem>>, vector<1x8x128xf32>,
    return
  }
  func.func @transform_0(%arg0: i32) -> (i32, i32) {
    %c0_i32 = arith.constant 0 : i32
    %c0_i32_0 = arith.constant 0 : i32
    return %arg0, %c0_i32 : i32, i32
  }
  func.func @transform_1(%arg0: i32) -> (i32, i32) {
    %c0_i32 = arith.constant 0 : i32
    %c0_i32_0 = arith.constant 0 : i32
    %c0_i32_1 = arith.constant 0 : i32
    return %c0_i32, %c0_i32_0 : i32, i32
  }
  func.func @transform_2(%arg0: i32) -> (i32, i32) {
    %c0_i32 = arith.constant 0 : i32
    %c0_i32_0 = arith.constant 0 : i32
    %c0_i32_1 = arith.constant 0 : i32
    return %c0_i32, %c0_i32_0 : i32, i32
  }
  func.func @transform_3(%arg0: i32) -> (i32, i32) {
    %c0_i32 = arith.constant 0 : i32
    %c0_i32_0 = arith.constant 0 : i32
    %c0_i32_1 = arith.constant 0 : i32
    return %c0_i32, %c0_i32_0 : i32, i32
  }
  func.func @transform_4(%arg0: i32) -> (i32, i32) {
    %c0_i32 = arith.constant 0 : i32
    %c0_i32_0 = arith.constant 0 : i32
    %c0_i32_1 = arith.constant 0 : i32
    return %c0_i32, %c0_i32_0 : i32, i32
  }
  func.func @transform_5(%arg0: i32) -> (i32, i32) {
    %c0_i32 = arith.constant 0 : i32
    %c0_i32_0 = arith.constant 0 : i32
    return %arg0, %c0_i32 : i32, i32
  }
  func.func @transform_6(%arg0: i32) -> (i32, i32) {
    %c0_i32 = arith.constant 0 : i32
    %c0_i32_0 = arith.constant 0 : i32
    return %arg0, %c0_i32 : i32, i32
  }
  func.func @transform_7(%arg0: i32) -> (i32, i32, i32) {
    %c0_i32 = arith.constant 0 : i32
    %c0_i32_0 = arith.constant 0 : i32
    %c0_i32_1 = arith.constant 0 : i32
    return %arg0, %c0_i32, %c0_i32_0 : i32, i32, i32
  }
  func.func @transform_8(%arg0: i32) -> (i32, i32, i32) {
    %c0_i32 = arith.constant 0 : i32
    %c0_i32_0 = arith.constant 0 : i32
    %c0_i32_1 = arith.constant 0 : i32
    return %arg0, %c0_i32, %c0_i32_0 : i32, i32, i32
  }
}

</mosaic_0001>

<bundles_post_ra>
// kernel: tpu_custom_call.1
= control target key start
LH: loop header
LB: loop body
LE: loop exit
PB: predicated region body
PF: predicated region fallthrough
CT: control target
= control target key end

     0   :  { %s2407_s0 = inlined_call_operand.hbm [shape: f32[256,128], index: 0, kind: input, shape index: {}]   ;;  %s2408_s1 = inlined_call_operand.hbm [shape: f32[128,256], index: 1, kind: input, shape index: {}]   ;;  %s2409_s2 = inlined_call_operand.hbm [shape: f32[256,128], index: 2, kind: input, shape index: {}]   ;;  %s2410_s3 = inlined_call_operand.vmem [shape: f32[1,256], index: 3, kind: input, shape index: {}]   ;;  %s2411_s4 = inlined_call_operand.vmem [shape: f32[1,128], index: 4, kind: input, shape index: {}]   ;;  %s2412_s5 = inlined_call_operand.hbm [shape: f32[256,128], index: 5, kind: output, shape index: {0}]   ;;  %s2413_s6 = inlined_call_operand.hbm [shape: f32[256,256], index: 6, kind: output, shape index: {1}]   ;;  %s2414_s7 = inlined_call_operand.hbm [shape: f32[2,8,128], index: 7, kind: output, shape index: {2}]   ;;  %s2415_s8 = inlined_call_operand.hbm [shape: f32[2,8,128], index: 8, kind: output, shape index: {3}]  }
   0x1   :  { %2422 = sst [smem:[#allocation19_spill]] %s2407_s0 }
   0x2   :  { %2423 = sst [smem:[#allocation20_spill]] %s2408_s1 }
   0x3   :  { %2424 = sst [smem:[#allocation21_spill]] %s2409_s2 }
   0x4   :  { %14 = vsyncpa [#allocation3], 0 }
   0x5   :  { %16 = vsyncpa [#allocation3 + $0x1], 0 }
   0x6   :  { %17 = vsyncpa [#allocation6], 0 }
   0x7   :  { %18 = vsyncpa [#allocation4], 0 }
   0x8   :  { %20 = vsyncpa [#allocation4 + $0x1], 0 }
   0x9   :  { %21 = vsyncpa [#allocation10], 0 }
   0xa   :  { %23 = vsyncpa [#allocation10 + $0x1], 0 }
   0xb   :  { %24 = vsyncpa [#allocation13], 0 }
   0xc   :  { %26 = vsyncpa [#allocation13 + $0x1], 0  ;;  %s1842_s27 = smov 0   ;;  %s1844_s28 = smov 0  }
   0xd   :  { %s1846_s29 = smov 0   ;;  %s1848_s30 = smov 0  }
   0xe LB: > { %s1863_s9 = sadd.s32 4294967295, %s1779_s30   ;;  %s2417_s10 = sadd.s32 4294967294, %s1779_s30   ;;  %s1779_s30 = sphi %s1848_s30, %s2447_s30   ;;  %s1775_s29 = sphi %s1846_s29, %s2446_s29   ;;  %s1771_s28 = sphi %s1844_s28, %s2445_s28   ;;  %s1767_s27 = sphi %s1842_s27, %s2444_s27  }
   0xf   : > { %p52_p0 = scmp.ne.s32.totalorder %s1771_s28, %s1767_s27  ;;  %p2416_p1 = scmp.eq.s32.totalorder %s1863_s9, 0 }
  0x10   : > { %p166_p3 = scmp.eq.s32.totalorder %s2417_s10, 1  ;;  %p1259_p5 = scmp.ge.s32.totalorder %s1779_s30, 1 }
  0x11   : > { %p1874_p4 = por %p2416_p1, %p52_p0  ;;  %p251_p7 = scmp.lt.s32.totalorder %s1779_s30, 3 }
  0x12   : > { %p1879_p6 = por %p166_p3, %p52_p0  ;;  %s1781_s14 = smov [#allocation5]  }
  0x13   : > { %s2425_s11 = scalar_select %p1874_p4, 1, 0 }
  0x14   : > { %s2426_s12 = scalar_select %p1879_p6, 1, 0 }
  0x15   : > { %p1884_p8 = pnand %p1259_p5, %p251_p7  ;;  %s263_s15 = sshll.u32 %s1781_s14, 4  ;;  %s1888_s15 = int_to_ptr.vmem [resolvable:$true] %s263_s15 }
  0x16   : > { %s1782_s17 = smov [#allocation7]   ;;  %s2429_s1 = sld [smem:[#allocation20_spill]] }
  0x17   : > { %p1458_p9 = pneg %p1884_p8  ;;  %s276_s18 = sshll.u32 %s1782_s17, 4  ;;  %s1899_s18 = int_to_ptr.vmem [resolvable:$true] %s276_s18 }
  0x19   : > { %p1895_p11 = pnand %p1458_p9, %p2416_p1 }
  0x1b   : > { %p1533_p13 = pneg %p1895_p11 }
  0x1c   : > { %s1531_s21 = scalar_lea.hbm %s2429_s1, 4096 }
  0x1d   : > { %p1532_p12 = scmp.ne.s32.totalorder %s2429_s1, %s1531_s21  ;;  %p1538_p5 = scmp.lt.u32.totalorder %s1531_s21, %s2429_s1 }
  0x1f   : > { %p1534_p0 = pnand %p1533_p13, %p1532_p12 }
  0x21   : > { %p1535_p3 = pneg %p1534_p0 }
  0x23   : > { %p1540_p7 = pnand %p1538_p5, %p1535_p3 }
  0x25   : > { %1543 = shalt.err (!%p1540_p7)
}
  0x26   : > { %s1544_s26 = scalar_lea.vmem %s1888_s15, 4096  ;;  %p1552_p2 = scmp.lt.s32.totalorder %s1888_s15, %s1888_s15 }
  0x27   : > { %p1545_p9 = scmp.ne.s32.totalorder %s1888_s15, %s1544_s26  ;;  %p1553_p12 = scmp.lt.s32.totalorder %s1544_s26, %s1544_s26 }
  0x29   : > { %p1547_p10 = pnand %p1545_p9, %p1533_p13  ;;  %p1554_p0 = por %p1553_p12, %p1552_p2 }
  0x2b   : > { %p1548_p1 = pneg %p1547_p10 }
  0x2d   : > { %p1555_p6 = pnand %p1554_p0, %p1548_p1 }
  0x2f   : > { %1558 = shalt.err (!%p1555_p6)
}
  0x30   : > { %s1783_s14 = smov 256   ;;  %s1784_s17 = smov 16  }
  0x31   : > { %1461 = dma.hbm_to_vmem [thread:$0]  (!%p1895_p11), %s2429_s1, 4096, %s1888_s15, [#allocation6], %s1783_s14, %s1783_s14, %s1784_s17  }
  0x32   : > { %s2430_s2 = sld [smem:[#allocation21_spill]] }
  0x38   : > { %s1559_s23 = scalar_lea.hbm %s2430_s2, 4096 }
  0x39   : > { %p1560_p2 = scmp.ne.s32.totalorder %s2430_s2, %s1559_s23  ;;  %p1566_p10 = scmp.lt.u32.totalorder %s1559_s23, %s2430_s2 }
  0x3b   : > { %p1562_p1 = pnand %p1560_p2, %p1533_p13 }
  0x3d   : > { %p1563_p6 = pneg %p1562_p1 }
  0x3f   : > { %p1568_p3 = pnand %p1566_p10, %p1563_p6 }
  0x41   : > { %1571 = shalt.err (!%p1568_p3)
}
  0x42   : > { %s1572_s15 = scalar_lea.vmem %s1899_s18, 4096  ;;  %p1580_p12 = scmp.lt.s32.totalorder %s1899_s18, %s1899_s18 }
  0x43   : > { %p1573_p5 = scmp.ne.s32.totalorder %s1899_s18, %s1572_s15  ;;  %p1581_p0 = scmp.lt.s32.totalorder %s1572_s15, %s1572_s15 }
  0x45   : > { %p1575_p7 = pnand %p1573_p5, %p1533_p13  ;;  %p1582_p2 = por %p1581_p0, %p1580_p12 }
  0x47   : > { %p1576_p9 = pneg %p1575_p7 }
  0x49   : > { %p1583_p1 = pnand %p1582_p2, %p1576_p9 }
  0x4b   : > { %1586 = shalt.err (!%p1583_p1)
}
  0x4c   : > { %s2418_s10 = smov 128   ;;  %s2419_s14 = smov 8  }
  0x4d   : > { %1464 = dma.hbm_to_vmem [thread:$0]  (!%p1895_p11), %s2430_s2, 4096, %s1899_s18, [#allocation6], %s2418_s10, %s2418_s10, %s2419_s14  }
  0x4e   : > { %s1957_s20 = sadd.s32 1, %s1779_s30   ;;  %s39_s22 = sadd.s32 1, %s1775_s29 }
  0x4f   : > { %s36_s21 = ssub.s32 %s1779_s30, %s1957_s20  ;;  %p46_p6 = scmp.ne.s32.totalorder %s1775_s29, %s1771_s28 }
  0x50   : > { %p37_p13 = scmp.eq.s32.totalorder %s36_s21, 0  ;;  %p47_p10 = scmp.eq.s32.totalorder %s1779_s30, 0 }
  0x51   : > { %p2431_p5 = scmp.eq.s32.totalorder %s1863_s9, 1  ;;  %p1484_p9 = scmp.lt.s32.totalorder %s1779_s30, 2 }
  0x52   : > { %s1966_s23 = scalar_select %p37_p13, %s1775_s29, %s39_s22  }
  0x53   : > { %p48_p3 = por %p47_p10, %p46_p6  ;;  %p1970_p7 = por %p2431_p5, %p46_p6 }
  0x54   : > { %s296_s24 = sand.u32 1, %s1775_s29   ;;  %s1288_s18 = sshll.u32 %s1779_s30, 11 }
  0x55   : > { %s2432_s16 = scalar_select %p1970_p7, 1, 0 }
  0x56   : > { %s1263_s25 = sshll.u32 %s296_s24, 7  ;;  %s2433_s0 = sld [smem:[#allocation19_spill]] }
  0x57   : > { %s300_s19 = scalar_lea.vmem [#allocation2], %s1263_s25  ;;  %p1984_p11 = pnand %p1484_p9, %p48_p3 }
  0x58   : > { %s307_s21 = sshll.u32 %s300_s19, 4  ;;  %s1988_s10 = scalar_lea.sflag [#allocation3], %s296_s24  ;;  %s1982_s21 = int_to_ptr.vmem [resolvable:$true] %s307_s21 }
  0x59   : > { %p1589_p0 = pneg %p1984_p11 }
  0x5c   : > { %s1980_s17 = scalar_lea.hbm %s2433_s0, %s1288_s18  ;;  %s1592_s26 = scalar_lea.hbm %s2433_s0, 4096 }
  0x5d   : > { %s1587_s14 = scalar_lea.hbm %s1980_s17, 2048  ;;  %p1593_p13 = scmp.lt.u32.totalorder %s1980_s17, %s2433_s0 }
  0x5e   : > { %p1588_p12 = scmp.ne.s32.totalorder %s1980_s17, %s1587_s14  ;;  %p1594_p6 = scmp.lt.u32.totalorder %s1592_s26, %s1587_s14 }
  0x5f   : > { %p1596_p3 = scmp.lt.u32.totalorder %s1587_s14, %s1980_s17 }
  0x60   : > { %p1590_p2 = pnand %p1589_p0, %p1588_p12  ;;  %p1595_p10 = por %p1594_p6, %p1593_p13 }
  0x62   : > { %p1591_p1 = pneg %p1590_p2  ;;  %p1597_p5 = por %p1596_p3, %p1595_p10 }
  0x64   : > { %p1598_p9 = pnand %p1597_p5, %p1591_p1 }
  0x66   : > { %1601 = shalt.err (!%p1598_p9)
}
  0x67   : > { %s1602_s24 = scalar_lea.vmem %s1982_s21, 2048  ;;  %s1787_s25 = smov [#allocation2]  }
  0x68   : > { %p1603_p12 = scmp.ne.s32.totalorder %s1982_s21, %s1602_s24  ;;  %s1607_s18 = sshll.u32 %s1787_s25, 4  ;;  %s1608_s18 = int_to_ptr.vmem [resolvable:$false] %s1607_s18 }
  0x69   : > { %s1609_s15 = scalar_lea.vmem %s1608_s18, 4096  ;;  %p1610_p4 = scmp.lt.s32.totalorder %s1982_s21, %s1608_s18 }
  0x6a   : > { %p1605_p2 = pnand %p1603_p12, %p1589_p0  ;;  %p1611_p13 = scmp.lt.s32.totalorder %s1609_s15, %s1602_s24 }
  0x6c   : > { %p1606_p7 = pneg %p1605_p2  ;;  %p1612_p6 = por %p1611_p13, %p1610_p4 }
  0x6e   : > { %p1613_p10 = pnand %p1612_p6, %p1606_p7 }
  0x70   : > { %1616 = shalt.err (!%p1613_p10)
}
  0x71   : > { %s2435_s14 = smov 8   ;;  %s2436_s26 = smov 128  }
  0x72   : > { %1468 = dma.hbm_to_vmem [thread:$0]  (!%p1984_p11), %s1980_s17, 2048, %s1982_s21, %s1988_s10, %s2436_s26, %s2436_s26, %s2435_s14  }
  0x73   : > { %319 = sbr.rel (%p1884_p8) target bundleno = 905 (0x389), region = 40  ;;  %s2022_s19 = sand.u32 (!%p1884_p8), 1, %s1771_s28  }
  0x74   : > { %s1267_s24 = sshll.u32 (!%p1884_p8), %s2022_s19, 7  ;;  %s322_s25 = scalar_lea.sflag (!%p1884_p8), [#allocation3], %s2022_s19 }
  0x75   : > { %s2028_s22 = scalar_lea.vmem (!%p1884_p8), [#allocation2], %s1267_s24  ;;  %p2437_p4 = scmp.ne.s32.totalorder (!%p1884_p8), %s2425_s11, 0 }
  0x7a   : > { %1746 = dma.done.wait (%p2437_p4), %s322_s25, 2048  }
  0x7b   : > { %1748 = vsyncadd (%p2437_p4), %s322_s25, 4294965248  ;;  %p2438_p7 = scmp.eq.s32.totalorder %s1863_s9, 0 }
  0x7d   : > { %1750 = dma.done.wait (%p2438_p7), [#allocation6], 8192   ;;  %p2439_p8 = pmov %p2438_p7 }
  0x7e   : > { %v1788_v0 = vmov 0.0   ;;  %v401_v1 = vld [vmem:[#allocation5 + $0x8] sm:$0xff]  ;;  %v403_v2 = vld [vmem:[#allocation5 + $0x18] sm:$0xff]  ;;  %v400_v3 = vld [vmem:[#allocation5] sm:$0xff]  ;;  %s1271_s10 = sshll.u32 %s2022_s19, 8  ;;  %s2202_s15 = scalar_lea.vmem [#allocation8], %s1267_s24 }
  0x7f   : > { %1752 = vsyncadd (%p2439_p8), [#allocation6], 4294959104  ;;  %508 = vmatprep.mubr.f32.mxu0 %v1788_v0  ;;  %v1372_v4 = vpack.c.bf16 %v403_v2, %v401_v1  ;;  %v402_v5 = vld [vmem:[#allocation5 + $0x10] sm:$0xff]  ;;  %v405_v6 = vld [vmem:[#allocation5 + $0x28] sm:$0xff]  ;;  %s2128_s17 = scalar_lea.vmem [#allocation9], %s1271_s10  ;;  %s1006_s14 = sand.u32 1, %s1863_s9  }
  0x80   : > { %v407_v7 = vld [vmem:[#allocation5 + $0x38] sm:$0xff]  ;;  %v1374_v8 = vpack.c.bf16 %v402_v5, %v400_v3  ;;  %v404_v10 = vld [vmem:[#allocation5 + $0x20] sm:$0xff]  ;;  %v406_v11 = vld [vmem:[#allocation5 + $0x30] sm:$0xff]  ;;  %s1291_s26 = sshll.u32 %s1863_s9, 12  ;;  %s1047_s11 = sshll.u32 %s2128_s17, 4  ;;  %s2260_s11 = int_to_ptr.vmem [resolvable:$true] %s1047_s11 }
  0x81   : > { %v1376_v9 = vpack.c.bf16 %v407_v7, %v405_v6  ;;  %v409_v12 = vld [vmem:[#allocation5 + $0x48] sm:$0xff]  ;;  %1373 = vmatprep.subr.bf16.mxu0 %v1372_v4  ;;  %v411_v13 = vld [vmem:[#allocation5 + $0x58] sm:$0xff]  ;;  %v1378_v14 = vpack.c.bf16 %v406_v11, %v404_v10  ;;  %v408_v16 = vld [vmem:[#allocation5 + $0x40] sm:$0xff]  ;;  %s2262_s13 = scalar_lea.sflag [#allocation10], %s1006_s14  ;;  %s1617_s10 = scalar_lea.vmem %s2260_s11, 4096 }
  0x82   : > { %1375 = vmatpush1.bf16.msra.mxu0 %v1374_v8  ;;  %v1380_v15 = vpack.c.bf16 %v411_v13, %v409_v12  ;;  %v410_v17 = vld [vmem:[#allocation5 + $0x50] sm:$0xff]  ;;  %v413_v18 = vld [vmem:[#allocation5 + $0x68] sm:$0xff]  ;;  %v415_v19 = vld [vmem:[#allocation5 + $0x78] sm:$0xff]  ;;  %p1618_p11 = scmp.ne.s32.totalorder %s2260_s11, %s1617_s10  ;;  %p2440_p0 = scmp.ne.s32.totalorder %s2432_s16, 0 }
  0x83   : > { %1377 = vmatprep.subr.bf16.mxu0 %v1376_v9  ;;  %v1382_v20 = vpack.c.bf16 %v410_v17, %v408_v16  ;;  %v1384_v21 = vpack.c.bf16 %v415_v19, %v413_v18  ;;  %v412_v22 = vld [vmem:[#allocation5 + $0x60] sm:$0xff]  ;;  %v414_v23 = vld [vmem:[#allocation5 + $0x70] sm:$0xff]  ;;  %v417_v24 = vld [vmem:[#allocation5 + $0x88] sm:$0xff]  ;;  %s1789_s21 = smov [#allocation9]  }
  0x84   : > { %v419_v25 = vld [vmem:[#allocation5 + $0x98] sm:$0xff]  ;;  %v1386_v26 = vpack.c.bf16 %v414_v23, %v412_v22  ;;  %v416_v28 = vld [vmem:[#allocation5 + $0x80] sm:$0xff]  ;;  %v418_v29 = vld [vmem:[#allocation5 + $0x90] sm:$0xff]  ;;  %p1619_p1 = pnand %p1618_p11, %p2440_p0  ;;  %s1621_s18 = sshll.u32 %s1789_s21, 4  ;;  %s1622_s18 = int_to_ptr.vmem [resolvable:$false] %s1621_s18 }
  0x85   : > { %v1388_v27 = vpack.c.bf16 %v419_v25, %v417_v24  ;;  %v421_v30 = vld [vmem:[#allocation5 + $0xa8] sm:$0xff]  ;;  %v423_v31 = vld [vmem:[#allocation5 + $0xb8] sm:$0xff]  ;;  %v420_v32 = vld [vmem:[#allocation5 + $0xa0] sm:$0xff]  ;;  %v1390_v34 = vpack.c.bf16 %v418_v29, %v416_v28  ;;  %s1623_s0 = scalar_lea.vmem %s1622_s18, 8192  ;;  %p1624_p5 = scmp.lt.s32.totalorder %s2260_s11, %s1622_s18 }
  0x86   : > { %1379 = vmatpush1.bf16.msra.mxu0 %v1378_v14  ;;  %v422_v33 = vld [vmem:[#allocation5 + $0xb0] sm:$0xff]  ;;  %v425_v35 = vld [vmem:[#allocation5 + $0xc8] sm:$0xff]  ;;  %v427_v36 = vld [vmem:[#allocation5 + $0xd8] sm:$0xff]  ;;  %v1392_v40 = vpack.c.bf16 %v423_v31, %v421_v30  ;;  %p1620_p3 = pneg %p1619_p1  ;;  %p1625_p9 = scmp.lt.s32.totalorder %s1623_s0, %s1617_s10 }
  0x87   : > { %1381 = vmatprep.subr.bf16.mxu0 %v1380_v15  ;;  %v653_v37 = vld [vmem:[#allocation7 + $0x80] sm:$0xff]  ;;  %v654_v38 = vld [vmem:[#allocation7 + $0x88] sm:$0xff]  ;;  %v655_v43 = vld [vmem:[#allocation7 + $0x90] sm:$0xff]  ;;  %v1394_v51 = vpack.c.bf16 %v422_v33, %v420_v32  ;;  %v1396_v55 = vpack.c.bf16 %v427_v36, %v425_v35 }
  0x88   : > { %v637_v39 = vld [vmem:[#allocation7] sm:$0xff]  ;;  %v1404_v41 = vpack.c.bf16 %v654_v38, %v653_v37  ;;  %v638_v42 = vld [vmem:[#allocation7 + $0x8] sm:$0xff]  ;;  %v656_v44 = vld [vmem:[#allocation7 + $0x98] sm:$0xff]  ;;  %p1626_p12 = por %p1625_p9, %p1624_p5 }
  0x89   : > { %v1406_v45 = vpack.c.bf16 %v638_v42, %v637_v39  ;;  %v1408_v46 = vpack.c.bf16 %v656_v44, %v655_v43  ;;  %v639_v47 = vld [vmem:[#allocation7 + $0x10] sm:$0xff]  ;;  %v640_v48 = vld [vmem:[#allocation7 + $0x18] sm:$0xff]  ;;  %v657_v49 = vld [vmem:[#allocation7 + $0xa0] sm:$0xff] }
  0x8a   : > { %1383 = vmatpush1.bf16.msra.mxu0 %v1382_v20  ;;  %1405 = vmatprep.subr.bf16.mxu1 %v1404_v41  ;;  %v658_v50 = vld [vmem:[#allocation7 + $0xa8] sm:$0xff]  ;;  %v424_v52 = vld [vmem:[#allocation5 + $0xc0] sm:$0xff]  ;;  %v426_v53 = vld [vmem:[#allocation5 + $0xd0] sm:$0xff]  ;;  %v1410_v54 = vpack.c.bf16 %v640_v48, %v639_v47  ;;  %p1627_p2 = pnand %p1626_p12, %p1620_p3 }
  0x8b   : > { %1385 = vmatprep.subr.bf16.mxu0 %v1384_v21  ;;  %1407 = vmatpush3.bf16.msra.mxu1 %v1406_v45  ;;  %v429_v56 = vld [vmem:[#allocation5 + $0xe8] sm:$0xff]  ;;  %v1412_v57 = vpack.c.bf16 %v658_v50, %v657_v49  ;;  %v641_v58 = vld [vmem:[#allocation7 + $0x20] sm:$0xff]  ;;  %v431_v60 = vld [vmem:[#allocation5 + $0xf8] sm:$0xff]  ;;  %v1398_v63 = vpack.c.bf16 %v426_v53, %v424_v52  ;;  %v434_v50 = vlaneseq }
  0x8c   : > { %1409 = vmatprep.subr.bf16.mxu1 %v1408_v46  ;;  %v642_v59 = vld [vmem:[#allocation7 + $0x28] sm:$0xff]  ;;  %v659_v61 = vld [vmem:[#allocation7 + $0xb0] sm:$0xff]  ;;  %v660_v62 = vld [vmem:[#allocation7 + $0xb8] sm:$0xff]  ;;  %v1400_v3 = vpack.c.bf16 %v431_v60, %v429_v56 }
  0x8d   : > { %v428_v1 = vld [vmem:[#allocation5 + $0xe0] sm:$0xff]  ;;  %v1414_v2 = vpack.c.bf16 %v642_v59, %v641_v58  ;;  %v430_v4 = vld [vmem:[#allocation5 + $0xf0] sm:$0xff]  ;;  %v1416_v5 = vpack.c.bf16 %v660_v62, %v659_v61  ;;  %v644_v7 = vld [vmem:[#allocation7 + $0x38] sm:$0xff] }
  0x8e   : > { %1387 = vmatpush1.bf16.msra.mxu0 %v1386_v26  ;;  %v643_v6 = vld [vmem:[#allocation7 + $0x30] sm:$0xff]  ;;  %v661_v8 = vld [vmem:[#allocation7 + $0xc0] sm:$0xff]  ;;  %v662_v9 = vld [vmem:[#allocation7 + $0xc8] sm:$0xff]  ;;  %v1402_v10 = vpack.c.bf16 %v430_v4, %v428_v1 }
  0x8f   : > { %1389 = vmatprep.subr.bf16.mxu0 %v1388_v27  ;;  %1411 = vmatpush3.bf16.msra.mxu1 %v1410_v54  ;;  %v1418_v11 = vpack.c.bf16 %v644_v7, %v643_v6  ;;  %v1420_v12 = vpack.c.bf16 %v662_v9, %v661_v8  ;;  %v645_v13 = vld [vmem:[#allocation7 + $0x40] sm:$0xff]  ;;  %v646_v14 = vld [vmem:[#allocation7 + $0x48] sm:$0xff]  ;;  %v663_v15 = vld [vmem:[#allocation7 + $0xd0] sm:$0xff] }
  0x90   : > { %1413 = vmatprep.subr.bf16.mxu1 %v1412_v57  ;;  %v664_v16 = vld [vmem:[#allocation7 + $0xd8] sm:$0xff]  ;;  %v2040_v17 = vld [vmem:[%s2028_s22] sm:$0xff]  ;;  %v1422_v18 = vpack.c.bf16 %v646_v14, %v645_v13  ;;  %v647_v20 = vld [vmem:[#allocation7 + $0x50] sm:$0xff] }
  0x91   : > { %v1424_v19 = vpack.c.bf16 %v664_v16, %v663_v15  ;;  %v648_v21 = vld [vmem:[#allocation7 + $0x58] sm:$0xff]  ;;  %v665_v22 = vld [vmem:[#allocation7 + $0xe0] sm:$0xff]  ;;  %v666_v23 = vld [vmem:[#allocation7 + $0xe8] sm:$0xff] }
  0x92   : > { %1391 = vmatpush1.bf16.msra.mxu0 %v1390_v34  ;;  %v2045_v24 = vld [vmem:[%s2028_s22 + $0x8] sm:$0xff]  ;;  %v1426_v25 = vpack.c.bf16 %v648_v21, %v647_v20  ;;  %v1428_v26 = vpack.c.bf16 %v666_v23, %v665_v22  ;;  %v2050_v27 = vld [vmem:[%s2028_s22 + $0x10] sm:$0xff]  ;;  %v2055_v28 = vld [vmem:[%s2028_s22 + $0x18] sm:$0xff] }
  0x93   : > { %1393 = vmatprep.subr.bf16.mxu0 %v1392_v40  ;;  %1415 = vmatpush3.bf16.msra.mxu1 %v1414_v2  ;;  %v2060_v29 = vld [vmem:[%s2028_s22 + $0x20] sm:$0xff]  ;;  %v2065_v30 = vld [vmem:[%s2028_s22 + $0x28] sm:$0xff]  ;;  %v2070_v31 = vld [vmem:[%s2028_s22 + $0x30] sm:$0xff] }
  0x94   : > { %1417 = vmatprep.subr.bf16.mxu1 %v1416_v5  ;;  %v2075_v32 = vld [vmem:[%s2028_s22 + $0x38] sm:$0xff]  ;;  %v2080_v33 = vld [vmem:[%s2028_s22 + $0x40] sm:$0xff]  ;;  %v2085_v34 = vld [vmem:[%s2028_s22 + $0x48] sm:$0xff] }
  0x95   : > { %v2090_v35 = vld [vmem:[%s2028_s22 + $0x50] sm:$0xff]  ;;  %v2095_v36 = vld [vmem:[%s2028_s22 + $0x58] sm:$0xff]  ;;  %v2100_v37 = vld [vmem:[%s2028_s22 + $0x60] sm:$0xff] }
  0x96   : > { %1395 = vmatpush1.bf16.msra.mxu0 %v1394_v51  ;;  %v2105_v38 = vld [vmem:[%s2028_s22 + $0x68] sm:$0xff]  ;;  %v2110_v39 = vld [vmem:[%s2028_s22 + $0x70] sm:$0xff]  ;;  %v2115_v40 = vld [vmem:[%s2028_s22 + $0x78] sm:$0xff]  ;;  %v435_v51 = vshrl.u32 %v434_v50, 7  ;;  %s2257_s22 = scalar_lea.hbm %s2413_s6, %s1291_s26 }
  0x97   : > { %1397 = vmatprep.subr.bf16.mxu0 %v1396_v55  ;;  %1419 = vmatpush3.bf16.msra.mxu1 %v1418_v11  ;;  %v649_v41 = vld [vmem:[#allocation7 + $0x60] sm:$0xff]  ;;  %v650_v42 = vld [vmem:[#allocation7 + $0x68] sm:$0xff]  ;;  %v667_v44 = vld [vmem:[#allocation7 + $0xf0] sm:$0xff] }
  0x98   : > { %1421 = vmatprep.subr.bf16.mxu1 %v1420_v12  ;;  %v1430_v43 = vpack.c.bf16 %v650_v42, %v649_v41  ;;  %v668_v45 = vld [vmem:[#allocation7 + $0xf8] sm:$0xff]  ;;  %v651_v47 = vld [vmem:[#allocation7 + $0x70] sm:$0xff]  ;;  %v432_v52 = vld [vmem:[%s2410_s3] sm:$0x3]  ;;  %v440_v53 = vsub.s32 1, %v435_v51 }
  0x99   : > { %v1432_v46 = vpack.c.bf16 %v668_v45, %v667_v44  ;;  %v652_v48 = vld [vmem:[#allocation7 + $0x78] sm:$0xff] }
  0x9a   : > { %1399 = vmatpush1.bf16.msra.mxu0 %v1398_v63  ;;  %v1434_v49 = vpack.c.bf16 %v652_v48, %v651_v47  ;;  %v2123_v55 = vrot.slane %v432_v52, %v440_v53 }
  0x9b   : > { %1401 = vmatprep.subr.bf16.mxu0 %v1400_v3  ;;  %1423 = vmatpush3.bf16.msra.mxu1 %v1422_v18 }
  0x9c   : > { %1425 = vmatprep.subr.bf16.mxu1 %v1424_v19 }
  0x9e   : > { %1403 = vmatpush1.bf16.msra.mxu0 %v1402_v10 }
  0x9f   : > { %1427 = vmatpush3.bf16.msra.mxu1 %v1426_v25 }
  0xa0   : > { %1429 = vmatprep.subr.bf16.mxu1 %v1428_v26 }
  0xa1   : > { %509 = vmatmul.mubr.f32.vlgmr.msra.gmra.mrb[0].mxu0 %v2040_v17 }
  0xa2   : > { %514 = vmatprep.mubr.f32.mxu0 %v1788_v0 }
  0xa3   : > { %1431 = vmatpush3.bf16.msra.mxu1 %v1430_v43 }
  0xa4   : > { %1433 = vmatprep.subr.bf16.mxu1 %v1432_v46 }
  0xa5   : > { %515 = vmatmul.mubr.f32.gmra.mrb[2].mxu0 %v2045_v24 }
  0xa6   : > { %520 = vmatprep.mubr.f32.mxu0 %v1788_v0 }
  0xa7   : > { %1435 = vmatpush3.bf16.msra.mxu1 %v1434_v49 }
  0xa9   : > { %521 = vmatmul.mubr.f32.gmra.mrb[4].mxu0 %v2050_v27 }
  0xaa   : > { %526 = vmatprep.mubr.f32.mxu0 %v1788_v0 }
  0xad   : > { %527 = vmatmul.mubr.f32.gmra.mrb[6].mxu0 %v2055_v28 }
  0xae   : > { %532 = vmatprep.mubr.f32.mxu0 %v1788_v0 }
  0xb1   : > { %533 = vmatmul.mubr.f32.gmra.mrb[8].mxu0 %v2060_v29 }
  0xb2   : > { %538 = vmatprep.mubr.f32.mxu0 %v1788_v0 }
  0xb5   : > { %539 = vmatmul.mubr.f32.gmra.mrb[10].mxu0 %v2065_v30 }
  0xb6   : > { %544 = vmatprep.mubr.f32.mxu0 %v1788_v0 }
  0xb9   : > { %545 = vmatmul.mubr.f32.gmra.mrb[12].mxu0 %v2070_v31 }
  0xba   : > { %550 = vmatprep.mubr.f32.mxu0 %v1788_v0 }
  0xbd   : > { %551 = vmatmul.mubr.f32.gmra.mrb[14].mxu0 %v2075_v32 }
  0xbe   : > { %556 = vmatprep.mubr.f32.mxu0 %v1788_v0 }
  0xc1   : > { %557 = vmatmul.mubr.f32.gmra.mrb[16].mxu0 %v2080_v33 }
  0xc2   : > { %562 = vmatprep.mubr.f32.mxu0 %v1788_v0 }
  0xc5   : > { %563 = vmatmul.mubr.f32.gmra.mrb[18].mxu0 %v2085_v34 }
  0xc6   : > { %568 = vmatprep.mubr.f32.mxu0 %v1788_v0 }
  0xc9   : > { %569 = vmatmul.mubr.f32.gmra.mrb[20].mxu0 %v2090_v35 }
  0xca   : > { %574 = vmatprep.mubr.f32.mxu0 %v1788_v0 }
  0xcd   : > { %575 = vmatmul.mubr.f32.gmra.mrb[22].mxu0 %v2095_v36 }
  0xce   : > { %580 = vmatprep.mubr.f32.mxu0 %v1788_v0 }
  0xd1   : > { %581 = vmatmul.mubr.f32.gmra.mrb[24].mxu0 %v2100_v37 }
  0xd2   : > { %586 = vmatprep.mubr.f32.mxu0 %v1788_v0 }
  0xd5   : > { %587 = vmatmul.mubr.f32.gmra.mrb[26].mxu0 %v2105_v38 }
  0xd6   : > { %592 = vmatprep.mubr.f32.mxu0 %v1788_v0 }
  0xd9   : > { %593 = vmatmul.mubr.f32.gmra.mrb[28].mxu0 %v2110_v39 }
  0xda   : > { %598 = vmatprep.mubr.f32.mxu0 %v1788_v0  ;;  %v436_v0 = vsub.s32 0, %v435_v51 }
  0xdc   : > { %v2121_v54 = vrot.slane %v432_v52, %v436_v0 }
  0xdd   : > { %599 = vmatmul.mubr.f32.gmra.mrb[30].mxu0 %v2115_v40 }
 0x174   : > { %v510_v56 = vpop.f32.mrb[0].mxu0 }
 0x175   : > { %v511_v57 = vadd.f32 %v510_v56, %v2121_v54  ;;  %v512_v58 = vpop.f32.mrb[1].mxu0 }
 0x176   : > { %v513_v59 = vadd.f32 %v512_v58, %v2123_v55 }
 0x177   : > { %v605_v60 = vmax.f32 %v511_v57, 0.0 }
 0x178   : > { %v606_v61 = vmax.f32 %v513_v59, 0.0  ;;  %v516_v62 = vpop.f32.mrb[2].mxu0 }
 0x179   : > { %821 = vst [vmem:[%s2128_s17] sm:$0xff] %v605_v60  ;;  %v927_v63 = vand.u32 2147483647, %v605_v60  ;;  %v517_v1 = vadd.f32 %v516_v62, %v2121_v54  ;;  %v518_v2 = vpop.f32.mrb[3].mxu0 }
 0x17a   : > { %822 = vst [vmem:[%s2128_s17 + $0x8] sm:$0xff] %v606_v61  ;;  %v928_v3 = vand.u32 2147483647, %v606_v61  ;;  %v519_v4 = vadd.f32 %v518_v2, %v2123_v55  ;;  %740 = vmatprep.mubr.f32.mxu1 %v606_v61 }
 0x17b   : > { %v607_v5 = vmax.f32 %v517_v1, 0.0  ;;  %741 = vmatmul.mubr.f32.vlgmr.msra.gmra.mrb[0].mxu1 %v605_v60 }
 0x17c   : > { %v959_v6 = vadd.f32 %v928_v3, %v927_v63  ;;  %v608_v7 = vmax.f32 %v519_v4, 0.0  ;;  %v522_v8 = vpop.f32.mrb[4].mxu0 }
 0x17d   : > { %823 = vst [vmem:[%s2128_s17 + $0x10] sm:$0xff] %v607_v5  ;;  %v929_v9 = vand.u32 2147483647, %v607_v5  ;;  %v523_v10 = vadd.f32 %v522_v8, %v2121_v54  ;;  %v524_v11 = vpop.f32.mrb[5].mxu0 }
 0x17e   : > { %824 = vst [vmem:[%s2128_s17 + $0x18] sm:$0xff] %v608_v7  ;;  %v930_v12 = vand.u32 2147483647, %v608_v7  ;;  %v525_v13 = vadd.f32 %v524_v11, %v2123_v55  ;;  %745 = vmatprep.mubr.f32.mxu1 %v608_v7 }
 0x17f   : > { %v960_v14 = vadd.f32 %v959_v6, %v929_v9  ;;  %v609_v15 = vmax.f32 %v523_v10, 0.0  ;;  %746 = vmatmul.mubr.f32.gmra.mrb[2].mxu1 %v607_v5 }
 0x180   : > { %v610_v16 = vmax.f32 %v525_v13, 0.0  ;;  %v528_v18 = vpop.f32.mrb[6].mxu0 }
 0x181   : > { %v961_v19 = vadd.f32 %v960_v14, %v930_v12  ;;  %825 = vst [vmem:[%s2128_s17 + $0x20] sm:$0xff] %v609_v15  ;;  %v931_v20 = vand.u32 2147483647, %v609_v15  ;;  %v529_v21 = vadd.f32 %v528_v18, %v2121_v54  ;;  %v530_v22 = vpop.f32.mrb[7].mxu0 }
 0x182   : > { %826 = vst [vmem:[%s2128_s17 + $0x28] sm:$0xff] %v610_v16  ;;  %v932_v23 = vand.u32 2147483647, %v610_v16  ;;  %v531_v25 = vadd.f32 %v530_v22, %v2123_v55  ;;  %750 = vmatprep.mubr.f32.mxu1 %v610_v16 }
 0x183   : > { %v962_v26 = vadd.f32 %v961_v19, %v931_v20  ;;  %v611_v41 = vmax.f32 %v529_v21, 0.0  ;;  %751 = vmatmul.mubr.f32.gmra.mrb[4].mxu1 %v609_v15 }
 0x184   : > { %v612_v42 = vmax.f32 %v531_v25, 0.0  ;;  %v534_v43 = vpop.f32.mrb[8].mxu0 }
 0x185   : > { %v963_v44 = vadd.f32 %v962_v26, %v932_v23  ;;  %827 = vst [vmem:[%s2128_s17 + $0x30] sm:$0xff] %v611_v41  ;;  %v933_v45 = vand.u32 2147483647, %v611_v41  ;;  %v535_v46 = vadd.f32 %v534_v43, %v2121_v54  ;;  %v536_v47 = vpop.f32.mrb[9].mxu0 }
 0x186   : > { %828 = vst [vmem:[%s2128_s17 + $0x38] sm:$0xff] %v612_v42  ;;  %v934_v48 = vand.u32 2147483647, %v612_v42  ;;  %v537_v49 = vadd.f32 %v536_v47, %v2123_v55  ;;  %755 = vmatprep.mubr.f32.mxu1 %v612_v42 }
 0x187   : > { %v964_v50 = vadd.f32 %v963_v44, %v933_v45  ;;  %v613_v51 = vmax.f32 %v535_v46, 0.0  ;;  %756 = vmatmul.mubr.f32.gmra.mrb[6].mxu1 %v611_v41 }
 0x188   : > { %v614_v0 = vmax.f32 %v537_v49, 0.0  ;;  %v540_v52 = vpop.f32.mrb[10].mxu0 }
 0x189   : > { %v965_v53 = vadd.f32 %v964_v50, %v934_v48  ;;  %829 = vst [vmem:[%s2128_s17 + $0x40] sm:$0xff] %v613_v51  ;;  %v935_v56 = vand.u32 2147483647, %v613_v51  ;;  %v541_v57 = vadd.f32 %v540_v52, %v2121_v54  ;;  %v542_v58 = vpop.f32.mrb[11].mxu0 }
 0x18a   : > { %830 = vst [vmem:[%s2128_s17 + $0x48] sm:$0xff] %v614_v0  ;;  %v936_v59 = vand.u32 2147483647, %v614_v0  ;;  %v543_v60 = vadd.f32 %v542_v58, %v2123_v55  ;;  %760 = vmatprep.mubr.f32.mxu1 %v614_v0 }
 0x18b   : > { %v966_v61 = vadd.f32 %v965_v53, %v935_v56  ;;  %v615_v62 = vmax.f32 %v541_v57, 0.0  ;;  %761 = vmatmul.mubr.f32.gmra.mrb[8].mxu1 %v613_v51 }
 0x18c   : > { %v616_v63 = vmax.f32 %v543_v60, 0.0  ;;  %v546_v1 = vpop.f32.mrb[12].mxu0 }
 0x18d   : > { %v967_v2 = vadd.f32 %v966_v61, %v936_v59  ;;  %831 = vst [vmem:[%s2128_s17 + $0x50] sm:$0xff] %v615_v62  ;;  %v937_v3 = vand.u32 2147483647, %v615_v62  ;;  %v547_v4 = vadd.f32 %v546_v1, %v2121_v54  ;;  %v548_v5 = vpop.f32.mrb[13].mxu0 }
 0x18e   : > { %832 = vst [vmem:[%s2128_s17 + $0x58] sm:$0xff] %v616_v63  ;;  %v938_v6 = vand.u32 2147483647, %v616_v63  ;;  %v549_v7 = vadd.f32 %v548_v5, %v2123_v55  ;;  %765 = vmatprep.mubr.f32.mxu1 %v616_v63 }
 0x18f   : > { %v968_v8 = vadd.f32 %v967_v2, %v937_v3  ;;  %v617_v9 = vmax.f32 %v547_v4, 0.0  ;;  %766 = vmatmul.mubr.f32.gmra.mrb[10].mxu1 %v615_v62 }
 0x190   : > { %v618_v10 = vmax.f32 %v549_v7, 0.0  ;;  %v552_v11 = vpop.f32.mrb[14].mxu0 }
 0x191   : > { %v969_v12 = vadd.f32 %v968_v8, %v938_v6  ;;  %833 = vst [vmem:[%s2128_s17 + $0x60] sm:$0xff] %v617_v9  ;;  %v939_v13 = vand.u32 2147483647, %v617_v9  ;;  %v553_v14 = vadd.f32 %v552_v11, %v2121_v54  ;;  %v554_v15 = vpop.f32.mrb[15].mxu0 }
 0x192   : > { %834 = vst [vmem:[%s2128_s17 + $0x68] sm:$0xff] %v618_v10  ;;  %v940_v16 = vand.u32 2147483647, %v618_v10  ;;  %v555_v18 = vadd.f32 %v554_v15, %v2123_v55  ;;  %770 = vmatprep.mubr.f32.mxu1 %v618_v10 }
 0x193   : > { %v970_v19 = vadd.f32 %v969_v12, %v939_v13  ;;  %v619_v20 = vmax.f32 %v553_v14, 0.0  ;;  %771 = vmatmul.mubr.f32.gmra.mrb[12].mxu1 %v617_v9 }
 0x194   : > { %v620_v21 = vmax.f32 %v555_v18, 0.0  ;;  %v558_v22 = vpop.f32.mrb[16].mxu0 }
 0x195   : > { %v971_v23 = vadd.f32 %v970_v19, %v940_v16  ;;  %835 = vst [vmem:[%s2128_s17 + $0x70] sm:$0xff] %v619_v20  ;;  %v941_v25 = vand.u32 2147483647, %v619_v20  ;;  %v559_v26 = vadd.f32 %v558_v22, %v2121_v54  ;;  %v560_v41 = vpop.f32.mrb[17].mxu0 }
 0x196   : > { %836 = vst [vmem:[%s2128_s17 + $0x78] sm:$0xff] %v620_v21  ;;  %v942_v42 = vand.u32 2147483647, %v620_v21  ;;  %v561_v43 = vadd.f32 %v560_v41, %v2123_v55  ;;  %775 = vmatprep.mubr.f32.mxu1 %v620_v21 }
 0x197   : > { %v972_v44 = vadd.f32 %v971_v23, %v941_v25  ;;  %v621_v45 = vmax.f32 %v559_v26, 0.0  ;;  %776 = vmatmul.mubr.f32.gmra.mrb[14].mxu1 %v619_v20 }
 0x198   : > { %v622_v46 = vmax.f32 %v561_v43, 0.0  ;;  %v564_v47 = vpop.f32.mrb[18].mxu0 }
 0x199   : > { %v973_v48 = vadd.f32 %v972_v44, %v942_v42  ;;  %837 = vst [vmem:[%s2128_s17 + $0x80] sm:$0xff] %v621_v45  ;;  %v943_v49 = vand.u32 2147483647, %v621_v45  ;;  %v565_v50 = vadd.f32 %v564_v47, %v2121_v54  ;;  %v566_v51 = vpop.f32.mrb[19].mxu0 }
 0x19a   : > { %838 = vst [vmem:[%s2128_s17 + $0x88] sm:$0xff] %v622_v46  ;;  %v944_v0 = vand.u32 2147483647, %v622_v46  ;;  %v567_v52 = vadd.f32 %v566_v51, %v2123_v55  ;;  %780 = vmatprep.mubr.f32.mxu1 %v622_v46 }
 0x19b   : > { %v974_v53 = vadd.f32 %v973_v48, %v943_v49  ;;  %v623_v56 = vmax.f32 %v565_v50, 0.0  ;;  %781 = vmatmul.mubr.f32.gmra.mrb[16].mxu1 %v621_v45 }
 0x19c   : > { %v624_v57 = vmax.f32 %v567_v52, 0.0  ;;  %v570_v58 = vpop.f32.mrb[20].mxu0 }
 0x19d   : > { %v975_v59 = vadd.f32 %v974_v53, %v944_v0  ;;  %839 = vst [vmem:[%s2128_s17 + $0x90] sm:$0xff] %v623_v56  ;;  %v945_v60 = vand.u32 2147483647, %v623_v56  ;;  %v571_v61 = vadd.f32 %v570_v58, %v2121_v54  ;;  %v572_v62 = vpop.f32.mrb[21].mxu0 }
 0x19e   : > { %840 = vst [vmem:[%s2128_s17 + $0x98] sm:$0xff] %v624_v57  ;;  %v946_v63 = vand.u32 2147483647, %v624_v57  ;;  %v573_v1 = vadd.f32 %v572_v62, %v2123_v55  ;;  %785 = vmatprep.mubr.f32.mxu1 %v624_v57 }
 0x19f   : > { %v976_v2 = vadd.f32 %v975_v59, %v945_v60  ;;  %v625_v3 = vmax.f32 %v571_v61, 0.0  ;;  %786 = vmatmul.mubr.f32.gmra.mrb[18].mxu1 %v623_v56 }
 0x1a0   : > { %v626_v4 = vmax.f32 %v573_v1, 0.0  ;;  %v576_v5 = vpop.f32.mrb[22].mxu0 }
 0x1a1   : > { %v977_v6 = vadd.f32 %v976_v2, %v946_v63  ;;  %841 = vst [vmem:[%s2128_s17 + $0xa0] sm:$0xff] %v625_v3  ;;  %v947_v7 = vand.u32 2147483647, %v625_v3  ;;  %v577_v8 = vadd.f32 %v576_v5, %v2121_v54  ;;  %v578_v9 = vpop.f32.mrb[23].mxu0 }
 0x1a2   : > { %842 = vst [vmem:[%s2128_s17 + $0xa8] sm:$0xff] %v626_v4  ;;  %v948_v10 = vand.u32 2147483647, %v626_v4  ;;  %v579_v11 = vadd.f32 %v578_v9, %v2123_v55  ;;  %790 = vmatprep.mubr.f32.mxu1 %v626_v4 }
 0x1a3   : > { %v978_v12 = vadd.f32 %v977_v6, %v947_v7  ;;  %v627_v13 = vmax.f32 %v577_v8, 0.0  ;;  %791 = vmatmul.mubr.f32.gmra.mrb[20].mxu1 %v625_v3 }
 0x1a4   : > { %v628_v14 = vmax.f32 %v579_v11, 0.0  ;;  %v582_v15 = vpop.f32.mrb[24].mxu0 }
 0x1a5   : > { %v979_v16 = vadd.f32 %v978_v12, %v948_v10  ;;  %843 = vst [vmem:[%s2128_s17 + $0xb0] sm:$0xff] %v627_v13  ;;  %v949_v18 = vand.u32 2147483647, %v627_v13  ;;  %v583_v19 = vadd.f32 %v582_v15, %v2121_v54  ;;  %v584_v20 = vpop.f32.mrb[25].mxu0 }
 0x1a6   : > { %844 = vst [vmem:[%s2128_s17 + $0xb8] sm:$0xff] %v628_v14  ;;  %v950_v21 = vand.u32 2147483647, %v628_v14  ;;  %v585_v22 = vadd.f32 %v584_v20, %v2123_v55  ;;  %795 = vmatprep.mubr.f32.mxu1 %v628_v14 }
 0x1a7   : > { %v980_v23 = vadd.f32 %v979_v16, %v949_v18  ;;  %v629_v25 = vmax.f32 %v583_v19, 0.0  ;;  %796 = vmatmul.mubr.f32.gmra.mrb[22].mxu1 %v627_v13 }
 0x1a8   : > { %v630_v26 = vmax.f32 %v585_v22, 0.0  ;;  %v588_v41 = vpop.f32.mrb[26].mxu0 }
 0x1a9   : > { %v981_v42 = vadd.f32 %v980_v23, %v950_v21  ;;  %845 = vst [vmem:[%s2128_s17 + $0xc0] sm:$0xff] %v629_v25  ;;  %v951_v43 = vand.u32 2147483647, %v629_v25  ;;  %v589_v44 = vadd.f32 %v588_v41, %v2121_v54  ;;  %v590_v45 = vpop.f32.mrb[27].mxu0 }
 0x1aa   : > { %846 = vst [vmem:[%s2128_s17 + $0xc8] sm:$0xff] %v630_v26  ;;  %v952_v46 = vand.u32 2147483647, %v630_v26  ;;  %v591_v47 = vadd.f32 %v590_v45, %v2123_v55  ;;  %800 = vmatprep.mubr.f32.mxu1 %v630_v26 }
 0x1ab   : > { %v982_v48 = vadd.f32 %v981_v42, %v951_v43  ;;  %v631_v49 = vmax.f32 %v589_v44, 0.0  ;;  %801 = vmatmul.mubr.f32.gmra.mrb[24].mxu1 %v629_v25 }
 0x1ac   : > { %v632_v50 = vmax.f32 %v591_v47, 0.0  ;;  %v594_v51 = vpop.f32.mrb[28].mxu0 }
 0x1ad   : > { %v983_v0 = vadd.f32 %v982_v48, %v952_v46  ;;  %847 = vst [vmem:[%s2128_s17 + $0xd0] sm:$0xff] %v631_v49  ;;  %v953_v52 = vand.u32 2147483647, %v631_v49  ;;  %v595_v53 = vadd.f32 %v594_v51, %v2121_v54  ;;  %v596_v56 = vpop.f32.mrb[29].mxu0 }
 0x1ae   : > { %848 = vst [vmem:[%s2128_s17 + $0xd8] sm:$0xff] %v632_v50  ;;  %v954_v57 = vand.u32 2147483647, %v632_v50  ;;  %v597_v58 = vadd.f32 %v596_v56, %v2123_v55  ;;  %805 = vmatprep.mubr.f32.mxu1 %v632_v50 }
 0x1af   : > { %v984_v59 = vadd.f32 %v983_v0, %v953_v52  ;;  %v633_v60 = vmax.f32 %v595_v53, 0.0  ;;  %806 = vmatmul.mubr.f32.gmra.mrb[26].mxu1 %v631_v49 }
 0x1b0   : > { %v634_v61 = vmax.f32 %v597_v58, 0.0  ;;  %v600_v62 = vpop.f32.mrb[30].mxu0 }
 0x1b1   : > { %v985_v63 = vadd.f32 %v984_v59, %v954_v57  ;;  %849 = vst [vmem:[%s2128_s17 + $0xe0] sm:$0xff] %v633_v60  ;;  %v955_v1 = vand.u32 2147483647, %v633_v60  ;;  %v601_v2 = vadd.f32 %v600_v62, %v2121_v54  ;;  %v602_v3 = vpop.f32.mrb[31].mxu0 }
 0x1b2   : > { %850 = vst [vmem:[%s2128_s17 + $0xe8] sm:$0xff] %v634_v61  ;;  %v956_v4 = vand.u32 2147483647, %v634_v61  ;;  %v603_v5 = vadd.f32 %v602_v3, %v2123_v55  ;;  %810 = vmatprep.mubr.f32.mxu1 %v634_v61  ;;  %v2197_v55 = vld [vmem:[%s2411_s4] ss:$0 sm:$0xff] }
 0x1b3   : > { %v635_v6 = vmax.f32 %v601_v2, 0.0  ;;  %811 = vmatmul.mubr.f32.gmra.mrb[28].mxu1 %v633_v60  ;;  %v986_v7 = vadd.f32 %v985_v63, %v955_v1 }
 0x1b4   : > { %v636_v8 = vmax.f32 %v603_v5, 0.0 }
 0x1b5   : > { %851 = vst [vmem:[%s2128_s17 + $0xf0] sm:$0xff] %v635_v6  ;;  %v957_v9 = vand.u32 2147483647, %v635_v6  ;;  %v987_v10 = vadd.f32 %v986_v7, %v956_v4 }
 0x1b6   : > { %852 = vst [vmem:[%s2128_s17 + $0xf8] sm:$0xff] %v636_v8  ;;  %815 = vmatprep.mubr.f32.mxu1 %v636_v8  ;;  %v958_v11 = vand.u32 2147483647, %v636_v8 }
 0x1b7   : > { %816 = vmatmul.mubr.f32.gmra.mrb[30].mxu1 %v635_v6  ;;  %v988_v12 = vadd.f32 %v987_v10, %v957_v9 }
 0x1b9   : > { %v2192_v54 = vadd.f32 %v988_v12, %v958_v11 }
 0x24e   : > { %v1324_v13 = vpop.f32.mrb[0].mxu1 }
 0x24f   : > { %v1325_v14 = vpop.f32.mrb[1].mxu1 }
 0x250   : > { %v1326_v15 = vadd.f32 %v1325_v14, %v1324_v13 }
 0x252   : > { %v743_v16 = vadd.f32 %v1326_v15, %v2197_v55  ;;  %v1327_v18 = vpop.f32.mrb[2].mxu1 }
 0x253   : > { %v1328_v19 = vpop.f32.mrb[3].mxu1 }
 0x254   : > { %853 = vst [vmem:[%s2202_s15] sm:$0xff] %v743_v16  ;;  %v1329_v20 = vadd.f32 %v1328_v19, %v1327_v18  ;;  %v869_v21 = vsub.f32 %v743_v16, %v2040_v17 }
 0x256   : > { %v748_v22 = vadd.f32 %v1329_v20, %v2197_v55  ;;  %v1330_v23 = vpop.f32.mrb[4].mxu1  ;;  %v885_v42 = vmul.f32 %v869_v21, %v869_v21 }
 0x257   : > { %v1331_v25 = vpop.f32.mrb[5].mxu1 }
 0x258   : > { %854 = vst [vmem:[%s2202_s15 + $0x8] sm:$0xff] %v748_v22  ;;  %v870_v26 = vsub.f32 %v748_v22, %v2045_v24  ;;  %v1332_v41 = vadd.f32 %v1331_v25, %v1330_v23 }
 0x25a   : > { %v886_v43 = vmul.f32 %v870_v26, %v870_v26  ;;  %v753_v44 = vadd.f32 %v1332_v41, %v2197_v55  ;;  %v1333_v45 = vpop.f32.mrb[6].mxu1 }
 0x25b   : > { %v1334_v46 = vpop.f32.mrb[7].mxu1 }
 0x25c   : > { %v901_v47 = vadd.f32 %v886_v43, %v885_v42  ;;  %855 = vst [vmem:[%s2202_s15 + $0x10] sm:$0xff] %v753_v44  ;;  %v871_v17 = vsub.f32 %v753_v44, %v2050_v27  ;;  %v1335_v48 = vadd.f32 %v1334_v46, %v1333_v45 }
 0x25e   : > { %v887_v49 = vmul.f32 %v871_v17, %v871_v17  ;;  %v758_v50 = vadd.f32 %v1335_v48, %v2197_v55  ;;  %v1336_v51 = vpop.f32.mrb[8].mxu1 }
 0x25f   : > { %v1337_v0 = vpop.f32.mrb[9].mxu1 }
 0x260   : > { %v902_v24 = vadd.f32 %v901_v47, %v887_v49  ;;  %856 = vst [vmem:[%s2202_s15 + $0x18] sm:$0xff] %v758_v50  ;;  %v872_v52 = vsub.f32 %v758_v50, %v2055_v28  ;;  %v1338_v53 = vadd.f32 %v1337_v0, %v1336_v51 }
 0x262   : > { %v888_v56 = vmul.f32 %v872_v52, %v872_v52  ;;  %v763_v57 = vadd.f32 %v1338_v53, %v2197_v55  ;;  %v1339_v58 = vpop.f32.mrb[10].mxu1 }
 0x263   : > { %v1340_v59 = vpop.f32.mrb[11].mxu1 }
 0x264   : > { %v903_v60 = vadd.f32 %v902_v24, %v888_v56  ;;  %857 = vst [vmem:[%s2202_s15 + $0x20] sm:$0xff] %v763_v57  ;;  %v873_v27 = vsub.f32 %v763_v57, %v2060_v29  ;;  %v1341_v61 = vadd.f32 %v1340_v59, %v1339_v58 }
 0x266   : > { %v889_v62 = vmul.f32 %v873_v27, %v873_v27  ;;  %v768_v63 = vadd.f32 %v1341_v61, %v2197_v55  ;;  %v1342_v1 = vpop.f32.mrb[12].mxu1 }
 0x267   : > { %v1343_v2 = vpop.f32.mrb[13].mxu1 }
 0x268   : > { %v904_v3 = vadd.f32 %v903_v60, %v889_v62  ;;  %858 = vst [vmem:[%s2202_s15 + $0x28] sm:$0xff] %v768_v63  ;;  %v874_v28 = vsub.f32 %v768_v63, %v2065_v30  ;;  %v1344_v4 = vadd.f32 %v1343_v2, %v1342_v1 }
 0x26a   : > { %v890_v5 = vmul.f32 %v874_v28, %v874_v28  ;;  %v773_v6 = vadd.f32 %v1344_v4, %v2197_v55  ;;  %v1345_v7 = vpop.f32.mrb[14].mxu1 }
 0x26b   : > { %v1346_v8 = vpop.f32.mrb[15].mxu1 }
 0x26c   : > { %v905_v9 = vadd.f32 %v904_v3, %v890_v5  ;;  %859 = vst [vmem:[%s2202_s15 + $0x30] sm:$0xff] %v773_v6  ;;  %v875_v29 = vsub.f32 %v773_v6, %v2070_v31  ;;  %v1347_v10 = vadd.f32 %v1346_v8, %v1345_v7 }
 0x26e   : > { %v891_v11 = vmul.f32 %v875_v29, %v875_v29  ;;  %v778_v12 = vadd.f32 %v1347_v10, %v2197_v55  ;;  %v1348_v13 = vpop.f32.mrb[16].mxu1 }
 0x26f   : > { %v1349_v14 = vpop.f32.mrb[17].mxu1 }
 0x270   : > { %v906_v15 = vadd.f32 %v905_v9, %v891_v11  ;;  %860 = vst [vmem:[%s2202_s15 + $0x38] sm:$0xff] %v778_v12  ;;  %v876_v30 = vsub.f32 %v778_v12, %v2075_v32  ;;  %v1350_v16 = vadd.f32 %v1349_v14, %v1348_v13 }
 0x272   : > { %v892_v18 = vmul.f32 %v876_v30, %v876_v30  ;;  %v783_v19 = vadd.f32 %v1350_v16, %v2197_v55  ;;  %v1351_v20 = vpop.f32.mrb[18].mxu1 }
 0x273   : > { %v1352_v21 = vpop.f32.mrb[19].mxu1 }
 0x274   : > { %v907_v22 = vadd.f32 %v906_v15, %v892_v18  ;;  %861 = vst [vmem:[%s2202_s15 + $0x40] sm:$0xff] %v783_v19  ;;  %v877_v31 = vsub.f32 %v783_v19, %v2080_v33  ;;  %v1353_v23 = vadd.f32 %v1352_v21, %v1351_v20 }
 0x276   : > { %v893_v25 = vmul.f32 %v877_v31, %v877_v31  ;;  %v788_v26 = vadd.f32 %v1353_v23, %v2197_v55  ;;  %v1354_v41 = vpop.f32.mrb[20].mxu1 }
 0x277   : > { %v1355_v42 = vpop.f32.mrb[21].mxu1 }
 0x278   : > { %v908_v43 = vadd.f32 %v907_v22, %v893_v25  ;;  %862 = vst [vmem:[%s2202_s15 + $0x48] sm:$0xff] %v788_v26  ;;  %v878_v32 = vsub.f32 %v788_v26, %v2085_v34  ;;  %v1356_v44 = vadd.f32 %v1355_v42, %v1354_v41 }
 0x27a   : > { %v894_v45 = vmul.f32 %v878_v32, %v878_v32  ;;  %v793_v46 = vadd.f32 %v1356_v44, %v2197_v55  ;;  %v1357_v47 = vpop.f32.mrb[22].mxu1 }
 0x27b   : > { %v1358_v17 = vpop.f32.mrb[23].mxu1 }
 0x27c   : > { %v909_v48 = vadd.f32 %v908_v43, %v894_v45  ;;  %863 = vst [vmem:[%s2202_s15 + $0x50] sm:$0xff] %v793_v46  ;;  %v879_v33 = vsub.f32 %v793_v46, %v2090_v35  ;;  %v1359_v49 = vadd.f32 %v1358_v17, %v1357_v47 }
 0x27e   : > { %v895_v50 = vmul.f32 %v879_v33, %v879_v33  ;;  %v798_v51 = vadd.f32 %v1359_v49, %v2197_v55  ;;  %v1360_v0 = vpop.f32.mrb[24].mxu1 }
 0x27f   : > { %v1361_v24 = vpop.f32.mrb[25].mxu1 }
 0x280   : > { %v910_v52 = vadd.f32 %v909_v48, %v895_v50  ;;  %864 = vst [vmem:[%s2202_s15 + $0x58] sm:$0xff] %v798_v51  ;;  %v880_v34 = vsub.f32 %v798_v51, %v2095_v36  ;;  %v1362_v53 = vadd.f32 %v1361_v24, %v1360_v0 }
 0x282   : > { %v896_v56 = vmul.f32 %v880_v34, %v880_v34  ;;  %v803_v57 = vadd.f32 %v1362_v53, %v2197_v55  ;;  %v1363_v58 = vpop.f32.mrb[26].mxu1 }
 0x283   : > { %v1364_v59 = vpop.f32.mrb[27].mxu1 }
 0x284   : > { %v911_v60 = vadd.f32 %v910_v52, %v896_v56  ;;  %865 = vst [vmem:[%s2202_s15 + $0x60] sm:$0xff] %v803_v57  ;;  %v881_v35 = vsub.f32 %v803_v57, %v2100_v37  ;;  %v1365_v27 = vadd.f32 %v1364_v59, %v1363_v58 }
 0x286   : > { %v897_v61 = vmul.f32 %v881_v35, %v881_v35  ;;  %v808_v62 = vadd.f32 %v1365_v27, %v2197_v55  ;;  %v1366_v63 = vpop.f32.mrb[28].mxu1 }
 0x287   : > { %v1367_v1 = vpop.f32.mrb[29].mxu1 }
 0x288   : > { %866 = vst [vmem:[%s2202_s15 + $0x68] sm:$0xff] %v808_v62  ;;  %v882_v36 = vsub.f32 %v808_v62, %v2105_v38  ;;  %v1368_v2 = vadd.f32 %v1367_v1, %v1366_v63  ;;  %v912_v3 = vadd.f32 %v911_v60, %v897_v61 }
 0x28a   : > { %v898_v28 = vmul.f32 %v882_v36, %v882_v36  ;;  %v813_v4 = vadd.f32 %v1368_v2, %v2197_v55  ;;  %v1369_v5 = vpop.f32.mrb[30].mxu1 }
 0x28b   : > { %v1370_v6 = vpop.f32.mrb[31].mxu1 }
 0x28c   : > { %867 = vst [vmem:[%s2202_s15 + $0x70] sm:$0xff] %v813_v4  ;;  %v1371_v37 = vadd.f32 %v1370_v6, %v1369_v5  ;;  %v883_v7 = vsub.f32 %v813_v4, %v2110_v39  ;;  %v913_v8 = vadd.f32 %v912_v3, %v898_v28 }
 0x28e   : > { %v818_v9 = vadd.f32 %v1371_v37, %v2197_v55  ;;  %v899_v29 = vmul.f32 %v883_v7, %v883_v7 }
 0x290   : > { %868 = vst [vmem:[%s2202_s15 + $0x78] sm:$0xff] %v818_v9  ;;  %v884_v38 = vsub.f32 %v818_v9, %v2115_v40  ;;  %v914_v10 = vadd.f32 %v913_v8, %v899_v29 }
 0x292   : > { %v900_v11 = vmul.f32 %v884_v38, %v884_v38 }
 0x294   : > { %v915_v12 = vadd.f32 %v914_v10, %v900_v11 }
 0x296   : > { %916 = vadd.xlane.f32.xlu0 %v915_v12 }
 0x29a   : > { %990 = vadd.xlane.f32.xlu0 %v2192_v54 }
 0x29b   : > { %1630 = shalt.err (!%p1627_p2)
}
 0x29c   : > { %s1631_s17 = scalar_lea.hbm %s2257_s22, 4096  ;;  %s1635_s24 = scalar_lea.hbm %s2413_s6, 8192 }
 0x29d   : > { %p1632_p13 = scmp.ne.s32.totalorder %s2257_s22, %s1631_s17  ;;  %p1636_p4 = scmp.lt.u32.totalorder %s2257_s22, %s2413_s6 }
 0x29e   : > { %p1637_p7 = scmp.lt.u32.totalorder %s1635_s24, %s1631_s17  ;;  %p1639_p11 = scmp.lt.u32.totalorder %s1631_s17, %s2257_s22 }
 0x29f   : > { %p1633_p6 = pnand %p1632_p13, %p2440_p0 }
 0x2a0   : > { %p1638_p8 = por %p1637_p7, %p1636_p4 }
 0x2a1   : > { %p1634_p10 = pneg %p1633_p6 }
 0x2a2   : > { %p1640_p1 = por %p1639_p11, %p1638_p8 }
 0x2a4   : > { %p1641_p3 = pnand %p1640_p1, %p1634_p10 }
 0x2a6   : > { %1644 = shalt.err (!%p1641_p3)
}
 0x2a7   : > { %s1790_s0 = smov 256   ;;  %s1791_s10 = smov 16  }
 0x2a8   : > { %1451 = dma.vmem_to_hbm [thread:$0]  (%p2440_p0), %s2260_s11, 4096, %s2257_s22, %s2262_s13, %s1790_s0, %s1790_s0, %s1791_s10  }
 0x2a9   : > { %s1289_s18 = sshll.u32 %s1863_s9, 11  ;;  %s1030_s24 = sshll.u32 %s2202_s15, 4  ;;  %s2293_s24 = int_to_ptr.vmem [resolvable:$true] %s1030_s24 }
 0x2aa   : > { %s2290_s17 = scalar_lea.hbm %s2412_s5, %s1289_s18  ;;  %s1002_s25 = scalar_lea.sflag [#allocation4], %s2022_s19 }
 0x2ab   : > { %s1645_s21 = scalar_lea.vmem %s2293_s24, 2048  ;;  %s1792_s1 = smov [#allocation8]  }
 0x2ac   : > { %p1646_p5 = scmp.ne.s32.totalorder %s2293_s24, %s1645_s21  ;;  %s1649_s22 = sshll.u32 %s1792_s1, 4  ;;  %s1650_s22 = int_to_ptr.vmem [resolvable:$false] %s1649_s22 }
 0x2ad   : > { %s1651_s11 = scalar_lea.vmem %s1650_s22, 4096  ;;  %p1652_p2 = scmp.lt.s32.totalorder %s2293_s24, %s1650_s22 }
 0x2ae   : > { %p1647_p9 = pnand %p1646_p5, %p2440_p0  ;;  %p1653_p13 = scmp.lt.s32.totalorder %s1651_s11, %s1645_s21 }
 0x2b0   : > { %p1648_p12 = pneg %p1647_p9  ;;  %p1654_p6 = por %p1653_p13, %p1652_p2 }
 0x2b2   : > { %p1655_p10 = pnand %p1654_p6, %p1648_p12 }
 0x2b4   : > { %1658 = shalt.err (!%p1655_p10)
}
 0x2b5   : > { %s1659_s15 = scalar_lea.hbm %s2290_s17, 2048  ;;  %s1663_s1 = scalar_lea.hbm %s2412_s5, 4096 }
 0x2b6   : > { %p1660_p4 = scmp.ne.s32.totalorder %s2290_s17, %s1659_s15  ;;  %p1664_p11 = scmp.lt.u32.totalorder %s2290_s17, %s2412_s5 }
 0x2b7   : > { %p1665_p1 = scmp.lt.u32.totalorder %s1663_s1, %s1659_s15  ;;  %p1667_p5 = scmp.lt.u32.totalorder %s1659_s15, %s2290_s17 }
 0x2b8   : > { %p1661_p7 = pnand %p1660_p4, %p2440_p0 }
 0x2b9   : > { %p1666_p3 = por %p1665_p1, %p1664_p11 }
 0x2ba   : > { %p1662_p8 = pneg %p1661_p7 }
 0x2bb   : > { %p1668_p9 = por %p1667_p5, %p1666_p3 }
 0x2bd   : > { %p1669_p12 = pnand %p1668_p9, %p1662_p8 }
 0x2bf   : > { %1672 = shalt.err (!%p1669_p12)
}
 0x2c0   : > { %s1793_s26 = smov 128   ;;  %s1794_s21 = smov 8  }
 0x2c1   : > { %1450 = dma.vmem_to_hbm [thread:$0]  (%p2440_p0), %s2293_s24, 2048, %s2290_s17, %s1002_s25, %s1793_s26, %s1793_s26, %s1794_s21  }
 0x2c2   : > { %s1272_s17 = sshll.u32 %s2022_s19, 3  ;;  %s1284_s22 = sshll.u32 %s1863_s9, 7 }
 0x2c3   : > { %s373_s24 = scalar_lea.vmem [#allocation11], %s1272_s17  ;;  %s2323_s11 = scalar_lea.vmem [#allocation12], %s1272_s17 }
 0x2c4   : > { %s1063_s25 = sshll.u32 %s373_s24, 4  ;;  %s1076_s15 = sshll.u32 %s2323_s11, 4  ;;  %s2321_s25 = int_to_ptr.vmem [resolvable:$true] %s1063_s25  ;;  %s2333_s15 = int_to_ptr.vmem [resolvable:$true] %s1076_s15 }
 0x2c5   : > { %s2331_s18 = scalar_lea.hbm %s2414_s7, %s1284_s22  ;;  %s1673_s14 = scalar_lea.vmem %s2321_s25, 128 }
 0x2c6   : > { %p1674_p2 = scmp.ne.s32.totalorder %s2321_s25, %s1673_s14  ;;  %s1795_s26 = smov [#allocation11]  }
 0x2c7   : > { %s1677_s21 = sshll.u32 %s1795_s26, 4  ;;  %s1678_s21 = int_to_ptr.vmem [resolvable:$false] %s1677_s21 }
 0x2c8   : > { %p1675_p13 = pnand %p1674_p2, %p2440_p0  ;;  %s1679_s17 = scalar_lea.vmem %s1678_s21, 256 }
 0x2c9   : > { %p1680_p10 = scmp.lt.s32.totalorder %s2321_s25, %s1678_s21  ;;  %p1681_p4 = scmp.lt.s32.totalorder %s1679_s17, %s1673_s14 }
 0x2ca   : > { %p1676_p6 = pneg %p1675_p13 }
 0x2cb   : > { %p1682_p7 = por %p1681_p4, %p1680_p10 }
 0x2cd   : > { %p1683_p8 = pnand %p1682_p7, %p1676_p6 }
 0x323   : > { %v917_v39 = vpop.xlane.xlu0 %916 }
 0x324   : > { %v918_v40 = vrot.slane %v917_v39, 4 }
 0x326   : > { %v919_v54 = vadd.f32 %v918_v40, %v917_v39 }
 0x327   : > { %v991_v55 = vpop.xlane.xlu0 %990 }
 0x328   : > { %v920_v13 = vrot.slane %v919_v54, 2  ;;  %v992_v14 = vrot.slane %v991_v55, 4 }
 0x32a   : > { %v993_v15 = vadd.f32 %v992_v14, %v991_v55  ;;  %v921_v30 = vadd.f32 %v920_v13, %v919_v54 }
 0x32c   : > { %v994_v16 = vrot.slane %v993_v15, 2  ;;  %v922_v18 = vrot.slane %v921_v30, 1 }
 0x32e   : > { %v995_v19 = vadd.f32 %v994_v16, %v993_v15  ;;  %v923_v20 = vadd.f32 %v922_v18, %v921_v30 }
 0x330   : > { %1436 = vpush %v923_v20  ;;  %v996_v21 = vrot.slane %v995_v19, 1 }
 0x332   : > { %v997_v22 = vadd.f32 %v996_v21, %v995_v19 }
 0x334   : > { %1438 = vpush %v997_v22 }
 0x361   : > { %s1437_s0 = spop %1436 }
 0x362   : > { %v925_v31 = vstv %s1437_s0 }
 0x363   : > { %926 = vst [vmem:[%s373_s24] sm:$0xff] %v925_v31 }
 0x364   : > { %1686 = shalt.err (!%p1683_p8)
}
 0x365   : > { %s1687_s24 = scalar_lea.hbm %s2331_s18, 128  ;;  %s1691_s1 = scalar_lea.hbm %s2414_s7, 256 }
 0x366   : > { %p1688_p11 = scmp.ne.s32.totalorder %s2331_s18, %s1687_s24  ;;  %p1692_p5 = scmp.lt.u32.totalorder %s2331_s18, %s2414_s7 }
 0x367   : > { %p1693_p9 = scmp.lt.u32.totalorder %s1691_s1, %s1687_s24  ;;  %p1695_p2 = scmp.lt.u32.totalorder %s1687_s24, %s2331_s18 }
 0x368   : > { %p1689_p1 = pnand %p1688_p11, %p2440_p0 }
 0x369   : > { %p1694_p12 = por %p1693_p9, %p1692_p5 }
 0x36a   : > { %p1690_p3 = pneg %p1689_p1 }
 0x36b   : > { %p1696_p13 = por %p1695_p2, %p1694_p12 }
 0x36d   : > { %p1697_p6 = pnand %p1696_p13, %p1690_p3 }
 0x36f   : > { %1700 = shalt.err (!%p1697_p6)
}
 0x370   : > { %1452 = dma.vmem_to_hbm [thread:$0]  (%p2440_p0), %s2321_s25, 128, %s2331_s18, %s2262_s13  }
 0x371   : > { %s1439_s14 = spop %1438  ;;  %s2362_s0 = scalar_lea.hbm %s2415_s8, %s1284_s22 }
 0x372   : > { %v999_v23 = vstv %s1439_s14  ;;  %s1017_s10 = scalar_lea.sflag [#allocation13], %s2022_s19  ;;  %s1701_s1 = scalar_lea.vmem %s2333_s15, 128 }
 0x373   : > { %1000 = vst [vmem:[%s2323_s11] sm:$0xff] %v999_v23  ;;  %p1702_p10 = scmp.ne.s32.totalorder %s2333_s15, %s1701_s1  ;;  %s1796_s26 = smov [#allocation12]  }
 0x374   : > { %s1705_s21 = sshll.u32 %s1796_s26, 4  ;;  %s1706_s21 = int_to_ptr.vmem [resolvable:$false] %s1705_s21 }
 0x375   : > { %p1703_p4 = pnand %p1702_p10, %p2440_p0  ;;  %s1707_s2 = scalar_lea.vmem %s1706_s21, 256 }
 0x376   : > { %p1708_p8 = scmp.lt.s32.totalorder %s2333_s15, %s1706_s21  ;;  %p1709_p11 = scmp.lt.s32.totalorder %s1707_s2, %s1701_s1 }
 0x377   : > { %p1704_p7 = pneg %p1703_p4 }
 0x378   : > { %p1710_p1 = por %p1709_p11, %p1708_p8 }
 0x37a   : > { %p1711_p3 = pnand %p1710_p1, %p1704_p7 }
 0x37c   : > { %1714 = shalt.err (!%p1711_p3)
}
 0x37d   : > { %s1715_s9 = scalar_lea.hbm %s2362_s0, 128  ;;  %s1719_s25 = scalar_lea.hbm %s2415_s8, 256 }
 0x37e   : > { %p1716_p5 = scmp.ne.s32.totalorder %s2362_s0, %s1715_s9  ;;  %p1720_p2 = scmp.lt.u32.totalorder %s2362_s0, %s2415_s8 }
 0x37f   : > { %p1721_p13 = scmp.lt.u32.totalorder %s1719_s25, %s1715_s9  ;;  %p1723_p10 = scmp.lt.u32.totalorder %s1715_s9, %s2362_s0 }
 0x380   : > { %p1717_p9 = pnand %p1716_p5, %p2440_p0 }
 0x381   : > { %p1722_p6 = por %p1721_p13, %p1720_p2 }
 0x382   : > { %p1718_p12 = pneg %p1717_p9 }
 0x383   : > { %p1724_p4 = por %p1723_p10, %p1722_p6 }
 0x385   : > { %p1725_p7 = pnand %p1724_p4, %p1718_p12 }
 0x387   : > { %1728 = shalt.err (!%p1725_p7)
}
 0x388   : > { %1453 = dma.vmem_to_hbm [thread:$0]  (%p2440_p0), %s2333_s15, 128, %s2362_s0, %s1017_s10  }
 0x389 PF: > { %s1088_s2 = sand.u32 1, %s1767_s27   ;;  %p2441_p8 = scmp.ne.s32.totalorder %s2426_s12, 0 }
 0x38a   : > { %p2442_p11 = scmp.ge.s32.totalorder %s1779_s30, 2  ;;  %s1089_s18 = scalar_lea.sflag [#allocation4], %s1088_s2 }
 0x38c   : > { %p1470_p1 = pnand %p2442_p11, %p2441_p8 }
 0x38e   : > { %1754 = dma.done.wait (!%p1470_p1), %s1089_s18, 2048  }
 0x38f   : > { %1756 = vsyncadd (!%p1470_p1), %s1089_s18, 4294965248  ;;  %s2443_s14 = sadd.s32 4294967294, %s1779_s30  }
 0x390   : > { %s1097_s17 = sand.u32 1, %s2443_s14  }
 0x391   : > { %s1098_s24 = scalar_lea.sflag [#allocation10], %s1097_s17 }
 0x392   : > { %1758 = dma.done.wait (!%p1470_p1), %s1098_s24, 4224  }
 0x393   : > { %1760 = vsyncadd (!%p1470_p1), %s1098_s24, 4294963072  ;;  %s1116_s16 = scalar_lea.sflag [#allocation13], %s1088_s2 }
 0x394   : > { %1762 = dma.done.wait (!%p1470_p1), %s1116_s16, 128  }
 0x395   : > { %1764 = vsyncadd (!%p1470_p1), %s1116_s16, 4294967168  ;;  %p29_p0 = scmp.ge.s32.totalorder %s1957_s20, 4   ;;  %s2444_s27 = smov %s1771_s28 }
 0x396   : > { %s2445_s28 = smov %s1775_s29  ;;  %s2446_s29 = smov %s1966_s23 }
 0x397   : > { %s2447_s30 = smov %s1957_s20  ;;  %31 = sbr.rel (!%p29_p0) target bundleno = 14 (0xe), region = 142 }
 0x39e   :  { %1121 = vsyncpa [#allocation3], 1 }
 0x39f   :  { %1123 = vsyncpa [#allocation3 + $0x1], 1 }
 0x3a0   :  { %1124 = vsyncpa [#allocation6], 1 }
 0x3a1   :  { %1125 = vsyncpa [#allocation4], 1 }
 0x3a2   :  { %1127 = vsyncpa [#allocation4 + $0x1], 1 }
 0x3a3   :  { %1128 = vsyncpa [#allocation10], 1 }
 0x3a4   :  { %1130 = vsyncpa [#allocation10 + $0x1], 1 }
 0x3a5   :  { %1131 = vsyncpa [#allocation13], 1 }
 0x3a6   :  { %1133 = vsyncpa [#allocation13 + $0x1], 1 }

// kernel: tpu_custom_call.1
= control target key start
LH: loop header
LB: loop body
LE: loop exit
PB: predicated region body
PF: predicated region fallthrough
CT: control target
= control target key end

     0   :  { %s2407_s0 = inlined_call_operand.hbm [shape: f32[256,128], index: 0, kind: input, shape index: {}]   ;;  %s2408_s1 = inlined_call_operand.hbm [shape: f32[128,256], index: 1, kind: input, shape index: {}]   ;;  %s2409_s2 = inlined_call_operand.hbm [shape: f32[256,128], index: 2, kind: input, shape index: {}]   ;;  %s2410_s3 = inlined_call_operand.vmem [shape: f32[1,256], index: 3, kind: input, shape index: {}]   ;;  %s2411_s4 = inlined_call_operand.vmem [shape: f32[1,128], index: 4, kind: input, shape index: {}]   ;;  %s2412_s5 = inlined_call_operand.hbm [shape: f32[256,128], index: 5, kind: output, shape index: {0}]   ;;  %s2413_s6 = inlined_call_operand.hbm [shape: f32[256,256], index: 6, kind: output, shape index: {1}]   ;;  %s2414_s7 = inlined_call_operand.hbm [shape: f32[2,8,128], index: 7, kind: output, shape index: {2}]   ;;  %s2415_s8 = inlined_call_operand.hbm [shape: f32[2,8,128], index: 8, kind: output, shape index: {3}]  }
   0x1   :  { %2422 = sst [smem:[#allocation19_spill]] %s2407_s0 }
   0x2   :  { %2423 = sst [smem:[#allocation20_spill]] %s2408_s1 }
   0x3   :  { %2424 = sst [smem:[#allocation21_spill]] %s2409_s2 }
   0x4   :  { %14 = vsyncpa [#allocation3], 0 }
   0x5   :  { %16 = vsyncpa [#allocation3 + $0x1], 0 }
   0x6   :  { %17 = vsyncpa [#allocation6], 0 }
   0x7   :  { %18 = vsyncpa [#allocation4], 0 }
   0x8   :  { %20 = vsyncpa [#allocation4 + $0x1], 0 }
   0x9   :  { %21 = vsyncpa [#allocation10], 0 }
   0xa   :  { %23 = vsyncpa [#allocation10 + $0x1], 0 }
   0xb   :  { %24 = vsyncpa [#allocation13], 0 }
   0xc   :  { %26 = vsyncpa [#allocation13 + $0x1], 0  ;;  %s1842_s27 = smov 0   ;;  %s1844_s28 = smov 0  }
   0xd   :  { %s1846_s29 = smov 0   ;;  %s1848_s30 = smov 0  }
   0xe LB: > { %s1863_s9 = sadd.s32 4294967295, %s1779_s30   ;;  %s2417_s10 = sadd.s32 4294967294, %s1779_s30   ;;  %s1779_s30 = sphi %s1848_s30, %s2447_s30   ;;  %s1775_s29 = sphi %s1846_s29, %s2446_s29   ;;  %s1771_s28 = sphi %s1844_s28, %s2445_s28   ;;  %s1767_s27 = sphi %s1842_s27, %s2444_s27  }
   0xf   : > { %p52_p0 = scmp.ne.s32.totalorder %s1771_s28, %s1767_s27  ;;  %p2416_p1 = scmp.eq.s32.totalorder %s1863_s9, 0 }
  0x10   : > { %p166_p3 = scmp.eq.s32.totalorder %s2417_s10, 1  ;;  %p1259_p5 = scmp.ge.s32.totalorder %s1779_s30, 1 }
  0x11   : > { %p1874_p4 = por %p2416_p1, %p52_p0  ;;  %p251_p7 = scmp.lt.s32.totalorder %s1779_s30, 3 }
  0x12   : > { %p1879_p6 = por %p166_p3, %p52_p0  ;;  %s1781_s14 = smov [#allocation5]  }
  0x13   : > { %s2425_s11 = scalar_select %p1874_p4, 1, 0 }
  0x14   : > { %s2426_s12 = scalar_select %p1879_p6, 1, 0 }
  0x15   : > { %p1884_p8 = pnand %p1259_p5, %p251_p7  ;;  %s263_s15 = sshll.u32 %s1781_s14, 4  ;;  %s1888_s15 = int_to_ptr.vmem [resolvable:$true] %s263_s15 }
  0x16   : > { %s1782_s17 = smov [#allocation7]   ;;  %s2429_s1 = sld [smem:[#allocation20_spill]] }
  0x17   : > { %p1458_p9 = pneg %p1884_p8  ;;  %s276_s18 = sshll.u32 %s1782_s17, 4  ;;  %s1899_s18 = int_to_ptr.vmem [resolvable:$true] %s276_s18 }
  0x19   : > { %p1895_p11 = pnand %p1458_p9, %p2416_p1 }
  0x1b   : > { %p1533_p13 = pneg %p1895_p11 }
  0x1c   : > { %s1531_s21 = scalar_lea.hbm %s2429_s1, 4096 }
  0x1d   : > { %p1532_p12 = scmp.ne.s32.totalorder %s2429_s1, %s1531_s21  ;;  %p1538_p5 = scmp.lt.u32.totalorder %s1531_s21, %s2429_s1 }
  0x1f   : > { %p1534_p0 = pnand %p1533_p13, %p1532_p12 }
  0x21   : > { %p1535_p3 = pneg %p1534_p0 }
  0x23   : > { %p1540_p7 = pnand %p1538_p5, %p1535_p3 }
  0x25   : > { %1543 = shalt.err (!%p1540_p7)
}
  0x26   : > { %s1544_s26 = scalar_lea.vmem %s1888_s15, 4096  ;;  %p1552_p2 = scmp.lt.s32.totalorder %s1888_s15, %s1888_s15 }
  0x27   : > { %p1545_p9 = scmp.ne.s32.totalorder %s1888_s15, %s1544_s26  ;;  %p1553_p12 = scmp.lt.s32.totalorder %s1544_s26, %s1544_s26 }
  0x29   : > { %p1547_p10 = pnand %p1545_p9, %p1533_p13  ;;  %p1554_p0 = por %p1553_p12, %p1552_p2 }
  0x2b   : > { %p1548_p1 = pneg %p1547_p10 }
  0x2d   : > { %p1555_p6 = pnand %p1554_p0, %p1548_p1 }
  0x2f   : > { %1558 = shalt.err (!%p1555_p6)
}
  0x30   : > { %s1783_s14 = smov 256   ;;  %s1784_s17 = smov 16  }
  0x31   : > { %1461 = dma.hbm_to_vmem [thread:$0]  (!%p1895_p11), %s2429_s1, 4096, %s1888_s15, [#allocation6], %s1783_s14, %s1783_s14, %s1784_s17  }
  0x32   : > { %s2430_s2 = sld [smem:[#allocation21_spill]] }
  0x38   : > { %s1559_s23 = scalar_lea.hbm %s2430_s2, 4096 }
  0x39   : > { %p1560_p2 = scmp.ne.s32.totalorder %s2430_s2, %s1559_s23  ;;  %p1566_p10 = scmp.lt.u32.totalorder %s1559_s23, %s2430_s2 }
  0x3b   : > { %p1562_p1 = pnand %p1560_p2, %p1533_p13 }
  0x3d   : > { %p1563_p6 = pneg %p1562_p1 }
  0x3f   : > { %p1568_p3 = pnand %p1566_p10, %p1563_p6 }
  0x41   : > { %1571 = shalt.err (!%p1568_p3)
}
  0x42   : > { %s1572_s15 = scalar_lea.vmem %s1899_s18, 4096  ;;  %p1580_p12 = scmp.lt.s32.totalorder %s1899_s18, %s1899_s18 }
  0x43   : > { %p1573_p5 = scmp.ne.s32.totalorder %s1899_s18, %s1572_s15  ;;  %p1581_p0 = scmp.lt.s32.totalorder %s1572_s15, %s1572_s15 }
  0x45   : > { %p1575_p7 = pnand %p1573_p5, %p1533_p13  ;;  %p1582_p2 = por %p1581_p0, %p1580_p12 }
  0x47   : > { %p1576_p9 = pneg %p1575_p7 }
  0x49   : > { %p1583_p1 = pnand %p1582_p2, %p1576_p9 }
  0x4b   : > { %1586 = shalt.err (!%p1583_p1)
}
  0x4c   : > { %s2418_s10 = smov 128   ;;  %s2419_s14 = smov 8  }
  0x4d   : > { %1464 = dma.hbm_to_vmem [thread:$0]  (!%p1895_p11), %s2430_s2, 4096, %s1899_s18, [#allocation6], %s2418_s10, %s2418_s10, %s2419_s14  }
  0x4e   : > { %s1957_s20 = sadd.s32 1, %s1779_s30   ;;  %s39_s22 = sadd.s32 1, %s1775_s29 }
  0x4f   : > { %s36_s21 = ssub.s32 %s1779_s30, %s1957_s20  ;;  %p46_p6 = scmp.ne.s32.totalorder %s1775_s29, %s1771_s28 }
  0x50   : > { %p37_p13 = scmp.eq.s32.totalorder %s36_s21, 0  ;;  %p47_p10 = scmp.eq.s32.totalorder %s1779_s30, 0 }
  0x51   : > { %p2431_p5 = scmp.eq.s32.totalorder %s1863_s9, 1  ;;  %p1484_p9 = scmp.lt.s32.totalorder %s1779_s30, 2 }
  0x52   : > { %s1966_s23 = scalar_select %p37_p13, %s1775_s29, %s39_s22  }
  0x53   : > { %p48_p3 = por %p47_p10, %p46_p6  ;;  %p1970_p7 = por %p2431_p5, %p46_p6 }
  0x54   : > { %s296_s24 = sand.u32 1, %s1775_s29   ;;  %s1288_s18 = sshll.u32 %s1779_s30, 11 }
  0x55   : > { %s2432_s16 = scalar_select %p1970_p7, 1, 0 }
  0x56   : > { %s1263_s25 = sshll.u32 %s296_s24, 7  ;;  %s2433_s0 = sld [smem:[#allocation19_spill]] }
  0x57   : > { %s300_s19 = scalar_lea.vmem [#allocation2], %s1263_s25  ;;  %p1984_p11 = pnand %p1484_p9, %p48_p3 }
  0x58   : > { %s307_s21 = sshll.u32 %s300_s19, 4  ;;  %s1988_s10 = scalar_lea.sflag [#allocation3], %s296_s24  ;;  %s1982_s21 = int_to_ptr.vmem [resolvable:$true] %s307_s21 }
  0x59   : > { %p1589_p0 = pneg %p1984_p11 }
  0x5c   : > { %s1980_s17 = scalar_lea.hbm %s2433_s0, %s1288_s18  ;;  %s1592_s26 = scalar_lea.hbm %s2433_s0, 4096 }
  0x5d   : > { %s1587_s14 = scalar_lea.hbm %s1980_s17, 2048  ;;  %p1593_p13 = scmp.lt.u32.totalorder %s1980_s17, %s2433_s0 }
  0x5e   : > { %p1588_p12 = scmp.ne.s32.totalorder %s1980_s17, %s1587_s14  ;;  %p1594_p6 = scmp.lt.u32.totalorder %s1592_s26, %s1587_s14 }
  0x5f   : > { %p1596_p3 = scmp.lt.u32.totalorder %s1587_s14, %s1980_s17 }
  0x60   : > { %p1590_p2 = pnand %p1589_p0, %p1588_p12  ;;  %p1595_p10 = por %p1594_p6, %p1593_p13 }
  0x62   : > { %p1591_p1 = pneg %p1590_p2  ;;  %p1597_p5 = por %p1596_p3, %p1595_p10 }
  0x64   : > { %p1598_p9 = pnand %p1597_p5, %p1591_p1 }
  0x66   : > { %1601 = shalt.err (!%p1598_p9)
}
  0x67   : > { %s1602_s24 = scalar_lea.vmem %s1982_s21, 2048  ;;  %s1787_s25 = smov [#allocation2]  }
  0x68   : > { %p1603_p12 = scmp.ne.s32.totalorder %s1982_s21, %s1602_s24  ;;  %s1607_s18 = sshll.u32 %s1787_s25, 4  ;;  %s1608_s18 = int_to_ptr.vmem [resolvable:$false] %s1607_s18 }
  0x69   : > { %s1609_s15 = scalar_lea.vmem %s1608_s18, 4096  ;;  %p1610_p4 = scmp.lt.s32.totalorder %s1982_s21, %s1608_s18 }
  0x6a   : > { %p1605_p2 = pnand %p1603_p12, %p1589_p0  ;;  %p1611_p13 = scmp.lt.s32.totalorder %s1609_s15, %s1602_s24 }
  0x6c   : > { %p1606_p7 = pneg %p1605_p2  ;;  %p1612_p6 = por %p1611_p13, %p1610_p4 }
  0x6e   : > { %p1613_p10 = pnand %p1612_p6, %p1606_p7 }
  0x70   : > { %1616 = shalt.err (!%p1613_p10)
}
  0x71   : > { %s2435_s14 = smov 8   ;;  %s2436_s26 = smov 128  }
  0x72   : > { %1468 = dma.hbm_to_vmem [thread:$0]  (!%p1984_p11), %s1980_s17, 2048, %s1982_s21, %s1988_s10, %s2436_s26, %s2436_s26, %s2435_s14  }
  0x73   : > { %319 = sbr.rel (%p1884_p8) target bundleno = 905 (0x389), region = 40  ;;  %s2022_s19 = sand.u32 (!%p1884_p8), 1, %s1771_s28  }
  0x74   : > { %s1267_s24 = sshll.u32 (!%p1884_p8), %s2022_s19, 7  ;;  %s322_s25 = scalar_lea.sflag (!%p1884_p8), [#allocation3], %s2022_s19 }
  0x75   : > { %s2028_s22 = scalar_lea.vmem (!%p1884_p8), [#allocation2], %s1267_s24  ;;  %p2437_p4 = scmp.ne.s32.totalorder (!%p1884_p8), %s2425_s11, 0 }
  0x7a   : > { %1746 = dma.done.wait (%p2437_p4), %s322_s25, 2048  }
  0x7b   : > { %1748 = vsyncadd (%p2437_p4), %s322_s25, 4294965248  ;;  %p2438_p7 = scmp.eq.s32.totalorder %s1863_s9, 0 }
  0x7d   : > { %1750 = dma.done.wait (%p2438_p7), [#allocation6], 8192   ;;  %p2439_p8 = pmov %p2438_p7 }
  0x7e   : > { %v1788_v0 = vmov 0.0   ;;  %v401_v1 = vld [vmem:[#allocation5 + $0x8] sm:$0xff]  ;;  %v403_v2 = vld [vmem:[#allocation5 + $0x18] sm:$0xff]  ;;  %v400_v3 = vld [vmem:[#allocation5] sm:$0xff]  ;;  %s1271_s10 = sshll.u32 %s2022_s19, 8  ;;  %s2202_s15 = scalar_lea.vmem [#allocation8], %s1267_s24 }
  0x7f   : > { %1752 = vsyncadd (%p2439_p8), [#allocation6], 4294959104  ;;  %508 = vmatprep.mubr.f32.mxu0 %v1788_v0  ;;  %v1372_v4 = vpack.c.bf16 %v403_v2, %v401_v1  ;;  %v402_v5 = vld [vmem:[#allocation5 + $0x10] sm:$0xff]  ;;  %v405_v6 = vld [vmem:[#allocation5 + $0x28] sm:$0xff]  ;;  %s2128_s17 = scalar_lea.vmem [#allocation9], %s1271_s10  ;;  %s1006_s14 = sand.u32 1, %s1863_s9  }
  0x80   : > { %v407_v7 = vld [vmem:[#allocation5 + $0x38] sm:$0xff]  ;;  %v1374_v8 = vpack.c.bf16 %v402_v5, %v400_v3  ;;  %v404_v10 = vld [vmem:[#allocation5 + $0x20] sm:$0xff]  ;;  %v406_v11 = vld [vmem:[#allocation5 + $0x30] sm:$0xff]  ;;  %s1291_s26 = sshll.u32 %s1863_s9, 12  ;;  %s1047_s11 = sshll.u32 %s2128_s17, 4  ;;  %s2260_s11 = int_to_ptr.vmem [resolvable:$true] %s1047_s11 }
  0x81   : > { %v1376_v9 = vpack.c.bf16 %v407_v7, %v405_v6  ;;  %v409_v12 = vld [vmem:[#allocation5 + $0x48] sm:$0xff]  ;;  %1373 = vmatprep.subr.bf16.mxu0 %v1372_v4  ;;  %v411_v13 = vld [vmem:[#allocation5 + $0x58] sm:$0xff]  ;;  %v1378_v14 = vpack.c.bf16 %v406_v11, %v404_v10  ;;  %v408_v16 = vld [vmem:[#allocation5 + $0x40] sm:$0xff]  ;;  %s2262_s13 = scalar_lea.sflag [#allocation10], %s1006_s14  ;;  %s1617_s10 = scalar_lea.vmem %s2260_s11, 4096 }
  0x82   : > { %1375 = vmatpush1.bf16.msra.mxu0 %v1374_v8  ;;  %v1380_v15 = vpack.c.bf16 %v411_v13, %v409_v12  ;;  %v410_v17 = vld [vmem:[#allocation5 + $0x50] sm:$0xff]  ;;  %v413_v18 = vld [vmem:[#allocation5 + $0x68] sm:$0xff]  ;;  %v415_v19 = vld [vmem:[#allocation5 + $0x78] sm:$0xff]  ;;  %p1618_p11 = scmp.ne.s32.totalorder %s2260_s11, %s1617_s10  ;;  %p2440_p0 = scmp.ne.s32.totalorder %s2432_s16, 0 }
  0x83   : > { %1377 = vmatprep.subr.bf16.mxu0 %v1376_v9  ;;  %v1382_v20 = vpack.c.bf16 %v410_v17, %v408_v16  ;;  %v1384_v21 = vpack.c.bf16 %v415_v19, %v413_v18  ;;  %v412_v22 = vld [vmem:[#allocation5 + $0x60] sm:$0xff]  ;;  %v414_v23 = vld [vmem:[#allocation5 + $0x70] sm:$0xff]  ;;  %v417_v24 = vld [vmem:[#allocation5 + $0x88] sm:$0xff]  ;;  %s1789_s21 = smov [#allocation9]  }
  0x84   : > { %v419_v25 = vld [vmem:[#allocation5 + $0x98] sm:$0xff]  ;;  %v1386_v26 = vpack.c.bf16 %v414_v23, %v412_v22  ;;  %v416_v28 = vld [vmem:[#allocation5 + $0x80] sm:$0xff]  ;;  %v418_v29 = vld [vmem:[#allocation5 + $0x90] sm:$0xff]  ;;  %p1619_p1 = pnand %p1618_p11, %p2440_p0  ;;  %s1621_s18 = sshll.u32 %s1789_s21, 4  ;;  %s1622_s18 = int_to_ptr.vmem [resolvable:$false] %s1621_s18 }
  0x85   : > { %v1388_v27 = vpack.c.bf16 %v419_v25, %v417_v24  ;;  %v421_v30 = vld [vmem:[#allocation5 + $0xa8] sm:$0xff]  ;;  %v423_v31 = vld [vmem:[#allocation5 + $0xb8] sm:$0xff]  ;;  %v420_v32 = vld [vmem:[#allocation5 + $0xa0] sm:$0xff]  ;;  %v1390_v34 = vpack.c.bf16 %v418_v29, %v416_v28  ;;  %s1623_s0 = scalar_lea.vmem %s1622_s18, 8192  ;;  %p1624_p5 = scmp.lt.s32.totalorder %s2260_s11, %s1622_s18 }
  0x86   : > { %1379 = vmatpush1.bf16.msra.mxu0 %v1378_v14  ;;  %v422_v33 = vld [vmem:[#allocation5 + $0xb0] sm:$0xff]  ;;  %v425_v35 = vld [vmem:[#allocation5 + $0xc8] sm:$0xff]  ;;  %v427_v36 = vld [vmem:[#allocation5 + $0xd8] sm:$0xff]  ;;  %v1392_v40 = vpack.c.bf16 %v423_v31, %v421_v30  ;;  %p1620_p3 = pneg %p1619_p1  ;;  %p1625_p9 = scmp.lt.s32.totalorder %s1623_s0, %s1617_s10 }
  0x87   : > { %1381 = vmatprep.subr.bf16.mxu0 %v1380_v15  ;;  %v653_v37 = vld [vmem:[#allocation7 + $0x80] sm:$0xff]  ;;  %v654_v38 = vld [vmem:[#allocation7 + $0x88] sm:$0xff]  ;;  %v655_v43 = vld [vmem:[#allocation7 + $0x90] sm:$0xff]  ;;  %v1394_v51 = vpack.c.bf16 %v422_v33, %v420_v32  ;;  %v1396_v55 = vpack.c.bf16 %v427_v36, %v425_v35 }
  0x88   : > { %v637_v39 = vld [vmem:[#allocation7] sm:$0xff]  ;;  %v1404_v41 = vpack.c.bf16 %v654_v38, %v653_v37  ;;  %v638_v42 = vld [vmem:[#allocation7 + $0x8] sm:$0xff]  ;;  %v656_v44 = vld [vmem:[#allocation7 + $0x98] sm:$0xff]  ;;  %p1626_p12 = por %p1625_p9, %p1624_p5 }
  0x89   : > { %v1406_v45 = vpack.c.bf16 %v638_v42, %v637_v39  ;;  %v1408_v46 = vpack.c.bf16 %v656_v44, %v655_v43  ;;  %v639_v47 = vld [vmem:[#allocation7 + $0x10] sm:$0xff]  ;;  %v640_v48 = vld [vmem:[#allocation7 + $0x18] sm:$0xff]  ;;  %v657_v49 = vld [vmem:[#allocation7 + $0xa0] sm:$0xff] }
  0x8a   : > { %1383 = vmatpush1.bf16.msra.mxu0 %v1382_v20  ;;  %1405 = vmatprep.subr.bf16.mxu1 %v1404_v41  ;;  %v658_v50 = vld [vmem:[#allocation7 + $0xa8] sm:$0xff]  ;;  %v424_v52 = vld [vmem:[#allocation5 + $0xc0] sm:$0xff]  ;;  %v426_v53 = vld [vmem:[#allocation5 + $0xd0] sm:$0xff]  ;;  %v1410_v54 = vpack.c.bf16 %v640_v48, %v639_v47  ;;  %p1627_p2 = pnand %p1626_p12, %p1620_p3 }
  0x8b   : > { %1385 = vmatprep.subr.bf16.mxu0 %v1384_v21  ;;  %1407 = vmatpush3.bf16.msra.mxu1 %v1406_v45  ;;  %v429_v56 = vld [vmem:[#allocation5 + $0xe8] sm:$0xff]  ;;  %v1412_v57 = vpack.c.bf16 %v658_v50, %v657_v49  ;;  %v641_v58 = vld [vmem:[#allocation7 + $0x20] sm:$0xff]  ;;  %v431_v60 = vld [vmem:[#allocation5 + $0xf8] sm:$0xff]  ;;  %v1398_v63 = vpack.c.bf16 %v426_v53, %v424_v52  ;;  %v434_v50 = vlaneseq }
  0x8c   : > { %1409 = vmatprep.subr.bf16.mxu1 %v1408_v46  ;;  %v642_v59 = vld [vmem:[#allocation7 + $0x28] sm:$0xff]  ;;  %v659_v61 = vld [vmem:[#allocation7 + $0xb0] sm:$0xff]  ;;  %v660_v62 = vld [vmem:[#allocation7 + $0xb8] sm:$0xff]  ;;  %v1400_v3 = vpack.c.bf16 %v431_v60, %v429_v56 }
  0x8d   : > { %v428_v1 = vld [vmem:[#allocation5 + $0xe0] sm:$0xff]  ;;  %v1414_v2 = vpack.c.bf16 %v642_v59, %v641_v58  ;;  %v430_v4 = vld [vmem:[#allocation5 + $0xf0] sm:$0xff]  ;;  %v1416_v5 = vpack.c.bf16 %v660_v62, %v659_v61  ;;  %v644_v7 = vld [vmem:[#allocation7 + $0x38] sm:$0xff] }
  0x8e   : > { %1387 = vmatpush1.bf16.msra.mxu0 %v1386_v26  ;;  %v643_v6 = vld [vmem:[#allocation7 + $0x30] sm:$0xff]  ;;  %v661_v8 = vld [vmem:[#allocation7 + $0xc0] sm:$0xff]  ;;  %v662_v9 = vld [vmem:[#allocation7 + $0xc8] sm:$0xff]  ;;  %v1402_v10 = vpack.c.bf16 %v430_v4, %v428_v1 }
  0x8f   : > { %1389 = vmatprep.subr.bf16.mxu0 %v1388_v27  ;;  %1411 = vmatpush3.bf16.msra.mxu1 %v1410_v54  ;;  %v1418_v11 = vpack.c.bf16 %v644_v7, %v643_v6  ;;  %v1420_v12 = vpack.c.bf16 %v662_v9, %v661_v8  ;;  %v645_v13 = vld [vmem:[#allocation7 + $0x40] sm:$0xff]  ;;  %v646_v14 = vld [vmem:[#allocation7 + $0x48] sm:$0xff]  ;;  %v663_v15 = vld [vmem:[#allocation7 + $0xd0] sm:$0xff] }
  0x90   : > { %1413 = vmatprep.subr.bf16.mxu1 %v1412_v57  ;;  %v664_v16 = vld [vmem:[#allocation7 + $0xd8] sm:$0xff]  ;;  %v2040_v17 = vld [vmem:[%s2028_s22] sm:$0xff]  ;;  %v1422_v18 = vpack.c.bf16 %v646_v14, %v645_v13  ;;  %v647_v20 = vld [vmem:[#allocation7 + $0x50] sm:$0xff] }
  0x91   : > { %v1424_v19 = vpack.c.bf16 %v664_v16, %v663_v15  ;;  %v648_v21 = vld [vmem:[#allocation7 + $0x58] sm:$0xff]  ;;  %v665_v22 = vld [vmem:[#allocation7 + $0xe0] sm:$0xff]  ;;  %v666_v23 = vld [vmem:[#allocation7 + $0xe8] sm:$0xff] }
  0x92   : > { %1391 = vmatpush1.bf16.msra.mxu0 %v1390_v34  ;;  %v2045_v24 = vld [vmem:[%s2028_s22 + $0x8] sm:$0xff]  ;;  %v1426_v25 = vpack.c.bf16 %v648_v21, %v647_v20  ;;  %v1428_v26 = vpack.c.bf16 %v666_v23, %v665_v22  ;;  %v2050_v27 = vld [vmem:[%s2028_s22 + $0x10] sm:$0xff]  ;;  %v2055_v28 = vld [vmem:[%s2028_s22 + $0x18] sm:$0xff] }
  0x93   : > { %1393 = vmatprep.subr.bf16.mxu0 %v1392_v40  ;;  %1415 = vmatpush3.bf16.msra.mxu1 %v1414_v2  ;;  %v2060_v29 = vld [vmem:[%s2028_s22 + $0x20] sm:$0xff]  ;;  %v2065_v30 = vld [vmem:[%s2028_s22 + $0x28] sm:$0xff]  ;;  %v2070_v31 = vld [vmem:[%s2028_s22 + $0x30] sm:$0xff] }
  0x94   : > { %1417 = vmatprep.subr.bf16.mxu1 %v1416_v5  ;;  %v2075_v32 = vld [vmem:[%s2028_s22 + $0x38] sm:$0xff]  ;;  %v2080_v33 = vld [vmem:[%s2028_s22 + $0x40] sm:$0xff]  ;;  %v2085_v34 = vld [vmem:[%s2028_s22 + $0x48] sm:$0xff] }
  0x95   : > { %v2090_v35 = vld [vmem:[%s2028_s22 + $0x50] sm:$0xff]  ;;  %v2095_v36 = vld [vmem:[%s2028_s22 + $0x58] sm:$0xff]  ;;  %v2100_v37 = vld [vmem:[%s2028_s22 + $0x60] sm:$0xff] }
  0x96   : > { %1395 = vmatpush1.bf16.msra.mxu0 %v1394_v51  ;;  %v2105_v38 = vld [vmem:[%s2028_s22 + $0x68] sm:$0xff]  ;;  %v2110_v39 = vld [vmem:[%s2028_s22 + $0x70] sm:$0xff]  ;;  %v2115_v40 = vld [vmem:[%s2028_s22 + $0x78] sm:$0xff]  ;;  %v435_v51 = vshrl.u32 %v434_v50, 7  ;;  %s2257_s22 = scalar_lea.hbm %s2413_s6, %s1291_s26 }
  0x97   : > { %1397 = vmatprep.subr.bf16.mxu0 %v1396_v55  ;;  %1419 = vmatpush3.bf16.msra.mxu1 %v1418_v11  ;;  %v649_v41 = vld [vmem:[#allocation7 + $0x60] sm:$0xff]  ;;  %v650_v42 = vld [vmem:[#allocation7 + $0x68] sm:$0xff]  ;;  %v667_v44 = vld [vmem:[#allocation7 + $0xf0] sm:$0xff] }
  0x98   : > { %1421 = vmatprep.subr.bf16.mxu1 %v1420_v12  ;;  %v1430_v43 = vpack.c.bf16 %v650_v42, %v649_v41  ;;  %v668_v45 = vld [vmem:[#allocation7 + $0xf8] sm:$0xff]  ;;  %v651_v47 = vld [vmem:[#allocation7 + $0x70] sm:$0xff]  ;;  %v432_v52 = vld [vmem:[%s2410_s3] sm:$0x3]  ;;  %v440_v53 = vsub.s32 1, %v435_v51 }
  0x99   : > { %v1432_v46 = vpack.c.bf16 %v668_v45, %v667_v44  ;;  %v652_v48 = vld [vmem:[#allocation7 + $0x78] sm:$0xff] }
  0x9a   : > { %1399 = vmatpush1.bf16.msra.mxu0 %v1398_v63  ;;  %v1434_v49 = vpack.c.bf16 %v652_v48, %v651_v47  ;;  %v2123_v55 = vrot.slane %v432_v52, %v440_v53 }
  0x9b   : > { %1401 = vmatprep.subr.bf16.mxu0 %v1400_v3  ;;  %1423 = vmatpush3.bf16.msra.mxu1 %v1422_v18 }
  0x9c   : > { %1425 = vmatprep.subr.bf16.mxu1 %v1424_v19 }
  0x9e   : > { %1403 = vmatpush1.bf16.msra.mxu0 %v1402_v10 }
  0x9f   : > { %1427 = vmatpush3.bf16.msra.mxu1 %v1426_v25 }
  0xa0   : > { %1429 = vmatprep.subr.bf16.mxu1 %v1428_v26 }
  0xa1   : > { %509 = vmatmul.mubr.f32.vlgmr.msra.gmra.mrb[0].mxu0 %v2040_v17 }
  0xa2   : > { %514 = vmatprep.mubr.f32.mxu0 %v1788_v0 }
  0xa3   : > { %1431 = vmatpush3.bf16.msra.mxu1 %v1430_v43 }
  0xa4   : > { %1433 = vmatprep.subr.bf16.mxu1 %v1432_v46 }
  0xa5   : > { %515 = vmatmul.mubr.f32.gmra.mrb[2].mxu0 %v2045_v24 }
  0xa6   : > { %520 = vmatprep.mubr.f32.mxu0 %v1788_v0 }
  0xa7   : > { %1435 = vmatpush3.bf16.msra.mxu1 %v1434_v49 }
  0xa9   : > { %521 = vmatmul.mubr.f32.gmra.mrb[4].mxu0 %v2050_v27 }
  0xaa   : > { %526 = vmatprep.mubr.f32.mxu0 %v1788_v0 }
  0xad   : > { %527 = vmatmul.mubr.f32.gmra.mrb[6].mxu0 %v2055_v28 }
  0xae   : > { %532 = vmatprep.mubr.f32.mxu0 %v1788_v0 }
  0xb1   : > { %533 = vmatmul.mubr.f32.gmra.mrb[8].mxu0 %v2060_v29 }
  0xb2   : > { %538 = vmatprep.mubr.f32.mxu0 %v1788_v0 }
  0xb5   : > { %539 = vmatmul.mubr.f32.gmra.mrb[10].mxu0 %v2065_v30 }
  0xb6   : > { %544 = vmatprep.mubr.f32.mxu0 %v1788_v0 }
  0xb9   : > { %545 = vmatmul.mubr.f32.gmra.mrb[12].mxu0 %v2070_v31 }
  0xba   : > { %550 = vmatprep.mubr.f32.mxu0 %v1788_v0 }
  0xbd   : > { %551 = vmatmul.mubr.f32.gmra.mrb[14].mxu0 %v2075_v32 }
  0xbe   : > { %556 = vmatprep.mubr.f32.mxu0 %v1788_v0 }
  0xc1   : > { %557 = vmatmul.mubr.f32.gmra.mrb[16].mxu0 %v2080_v33 }
  0xc2   : > { %562 = vmatprep.mubr.f32.mxu0 %v1788_v0 }
  0xc5   : > { %563 = vmatmul.mubr.f32.gmra.mrb[18].mxu0 %v2085_v34 }
  0xc6   : > { %568 = vmatprep.mubr.f32.mxu0 %v1788_v0 }
  0xc9   : > { %569 = vmatmul.mubr.f32.gmra.mrb[20].mxu0 %v2090_v35 }
  0xca   : > { %574 = vmatprep.mubr.f32.mxu0 %v1788_v0 }
  0xcd   : > { %575 = vmatmul.mubr.f32.gmra.mrb[22].mxu0 %v2095_v36 }
  0xce   : > { %580 = vmatprep.mubr.f32.mxu0 %v1788_v0 }
  0xd1   : > { %581 = vmatmul.mubr.f32.gmra.mrb[24].mxu0 %v2100_v37 }
  0xd2   : > { %586 = vmatprep.mubr.f32.mxu0 %v1788_v0 }
  0xd5   : > { %587 = vmatmul.mubr.f32.gmra.mrb[26].mxu0 %v2105_v38 }
  0xd6   : > { %592 = vmatprep.mubr.f32.mxu0 %v1788_v0 }
  0xd9   : > { %593 = vmatmul.mubr.f32.gmra.mrb[28].mxu0 %v2110_v39 }
  0xda   : > { %598 = vmatprep.mubr.f32.mxu0 %v1788_v0  ;;  %v436_v0 = vsub.s32 0, %v435_v51 }
  0xdc   : > { %v2121_v54 = vrot.slane %v432_v52, %v436_v0 }
  0xdd   : > { %599 = vmatmul.mubr.f32.gmra.mrb[30].mxu0 %v2115_v40 }
 0x174   : > { %v510_v56 = vpop.f32.mrb[0].mxu0 }
 0x175   : > { %v511_v57 = vadd.f32 %v510_v56, %v2121_v54  ;;  %v512_v58 = vpop.f32.mrb[1].mxu0 }
 0x176   : > { %v513_v59 = vadd.f32 %v512_v58, %v2123_v55 }
 0x177   : > { %v605_v60 = vmax.f32 %v511_v57, 0.0 }
 0x178   : > { %v606_v61 = vmax.f32 %v513_v59, 0.0  ;;  %v516_v62 = vpop.f32.mrb[2].mxu0 }
 0x179   : > { %821 = vst [vmem:[%s2128_s17] sm:$0xff] %v605_v60  ;;  %v927_v63 = vand.u32 2147483647, %v605_v60  ;;  %v517_v1 = vadd.f32 %v516_v62, %v2121_v54  ;;  %v518_v2 = vpop.f32.mrb[3].mxu0 }
 0x17a   : > { %822 = vst [vmem:[%s2128_s17 + $0x8] sm:$0xff] %v606_v61  ;;  %v928_v3 = vand.u32 2147483647, %v606_v61  ;;  %v519_v4 = vadd.f32 %v518_v2, %v2123_v55  ;;  %740 = vmatprep.mubr.f32.mxu1 %v606_v61 }
 0x17b   : > { %v607_v5 = vmax.f32 %v517_v1, 0.0  ;;  %741 = vmatmul.mubr.f32.vlgmr.msra.gmra.mrb[0].mxu1 %v605_v60 }
 0x17c   : > { %v959_v6 = vadd.f32 %v928_v3, %v927_v63  ;;  %v608_v7 = vmax.f32 %v519_v4, 0.0  ;;  %v522_v8 = vpop.f32.mrb[4].mxu0 }
 0x17d   : > { %823 = vst [vmem:[%s2128_s17 + $0x10] sm:$0xff] %v607_v5  ;;  %v929_v9 = vand.u32 2147483647, %v607_v5  ;;  %v523_v10 = vadd.f32 %v522_v8, %v2121_v54  ;;  %v524_v11 = vpop.f32.mrb[5].mxu0 }
 0x17e   : > { %824 = vst [vmem:[%s2128_s17 + $0x18] sm:$0xff] %v608_v7  ;;  %v930_v12 = vand.u32 2147483647, %v608_v7  ;;  %v525_v13 = vadd.f32 %v524_v11, %v2123_v55  ;;  %745 = vmatprep.mubr.f32.mxu1 %v608_v7 }
 0x17f   : > { %v960_v14 = vadd.f32 %v959_v6, %v929_v9  ;;  %v609_v15 = vmax.f32 %v523_v10, 0.0  ;;  %746 = vmatmul.mubr.f32.gmra.mrb[2].mxu1 %v607_v5 }
 0x180   : > { %v610_v16 = vmax.f32 %v525_v13, 0.0  ;;  %v528_v18 = vpop.f32.mrb[6].mxu0 }
 0x181   : > { %v961_v19 = vadd.f32 %v960_v14, %v930_v12  ;;  %825 = vst [vmem:[%s2128_s17 + $0x20] sm:$0xff] %v609_v15  ;;  %v931_v20 = vand.u32 2147483647, %v609_v15  ;;  %v529_v21 = vadd.f32 %v528_v18, %v2121_v54  ;;  %v530_v22 = vpop.f32.mrb[7].mxu0 }
 0x182   : > { %826 = vst [vmem:[%s2128_s17 + $0x28] sm:$0xff] %v610_v16  ;;  %v932_v23 = vand.u32 2147483647, %v610_v16  ;;  %v531_v25 = vadd.f32 %v530_v22, %v2123_v55  ;;  %750 = vmatprep.mubr.f32.mxu1 %v610_v16 }
 0x183   : > { %v962_v26 = vadd.f32 %v961_v19, %v931_v20  ;;  %v611_v41 = vmax.f32 %v529_v21, 0.0  ;;  %751 = vmatmul.mubr.f32.gmra.mrb[4].mxu1 %v609_v15 }
 0x184   : > { %v612_v42 = vmax.f32 %v531_v25, 0.0  ;;  %v534_v43 = vpop.f32.mrb[8].mxu0 }
 0x185   : > { %v963_v44 = vadd.f32 %v962_v26, %v932_v23  ;;  %827 = vst [vmem:[%s2128_s17 + $0x30] sm:$0xff] %v611_v41  ;;  %v933_v45 = vand.u32 2147483647, %v611_v41  ;;  %v535_v46 = vadd.f32 %v534_v43, %v2121_v54  ;;  %v536_v47 = vpop.f32.mrb[9].mxu0 }
 0x186   : > { %828 = vst [vmem:[%s2128_s17 + $0x38] sm:$0xff] %v612_v42  ;;  %v934_v48 = vand.u32 2147483647, %v612_v42  ;;  %v537_v49 = vadd.f32 %v536_v47, %v2123_v55  ;;  %755 = vmatprep.mubr.f32.mxu1 %v612_v42 }
 0x187   : > { %v964_v50 = vadd.f32 %v963_v44, %v933_v45  ;;  %v613_v51 = vmax.f32 %v535_v46, 0.0  ;;  %756 = vmatmul.mubr.f32.gmra.mrb[6].mxu1 %v611_v41 }
 0x188   : > { %v614_v0 = vmax.f32 %v537_v49, 0.0  ;;  %v540_v52 = vpop.f32.mrb[10].mxu0 }
 0x189   : > { %v965_v53 = vadd.f32 %v964_v50, %v934_v48  ;;  %829 = vst [vmem:[%s2128_s17 + $0x40] sm:$0xff] %v613_v51  ;;  %v935_v56 = vand.u32 2147483647, %v613_v51  ;;  %v541_v57 = vadd.f32 %v540_v52, %v2121_v54  ;;  %v542_v58 = vpop.f32.mrb[11].mxu0 }
 0x18a   : > { %830 = vst [vmem:[%s2128_s17 + $0x48] sm:$0xff] %v614_v0  ;;  %v936_v59 = vand.u32 2147483647, %v614_v0  ;;  %v543_v60 = vadd.f32 %v542_v58, %v2123_v55  ;;  %760 = vmatprep.mubr.f32.mxu1 %v614_v0 }
 0x18b   : > { %v966_v61 = vadd.f32 %v965_v53, %v935_v56  ;;  %v615_v62 = vmax.f32 %v541_v57, 0.0  ;;  %761 = vmatmul.mubr.f32.gmra.mrb[8].mxu1 %v613_v51 }
 0x18c   : > { %v616_v63 = vmax.f32 %v543_v60, 0.0  ;;  %v546_v1 = vpop.f32.mrb[12].mxu0 }
 0x18d   : > { %v967_v2 = vadd.f32 %v966_v61, %v936_v59  ;;  %831 = vst [vmem:[%s2128_s17 + $0x50] sm:$0xff] %v615_v62  ;;  %v937_v3 = vand.u32 2147483647, %v615_v62  ;;  %v547_v4 = vadd.f32 %v546_v1, %v2121_v54  ;;  %v548_v5 = vpop.f32.mrb[13].mxu0 }
 0x18e   : > { %832 = vst [vmem:[%s2128_s17 + $0x58] sm:$0xff] %v616_v63  ;;  %v938_v6 = vand.u32 2147483647, %v616_v63  ;;  %v549_v7 = vadd.f32 %v548_v5, %v2123_v55  ;;  %765 = vmatprep.mubr.f32.mxu1 %v616_v63 }
 0x18f   : > { %v968_v8 = vadd.f32 %v967_v2, %v937_v3  ;;  %v617_v9 = vmax.f32 %v547_v4, 0.0  ;;  %766 = vmatmul.mubr.f32.gmra.mrb[10].mxu1 %v615_v62 }
 0x190   : > { %v618_v10 = vmax.f32 %v549_v7, 0.0  ;;  %v552_v11 = vpop.f32.mrb[14].mxu0 }
 0x191   : > { %v969_v12 = vadd.f32 %v968_v8, %v938_v6  ;;  %833 = vst [vmem:[%s2128_s17 + $0x60] sm:$0xff] %v617_v9  ;;  %v939_v13 = vand.u32 2147483647, %v617_v9  ;;  %v553_v14 = vadd.f32 %v552_v11, %v2121_v54  ;;  %v554_v15 = vpop.f32.mrb[15].mxu0 }
 0x192   : > { %834 = vst [vmem:[%s2128_s17 + $0x68] sm:$0xff] %v618_v10  ;;  %v940_v16 = vand.u32 2147483647, %v618_v10  ;;  %v555_v18 = vadd.f32 %v554_v15, %v2123_v55  ;;  %770 = vmatprep.mubr.f32.mxu1 %v618_v10 }
 0x193   : > { %v970_v19 = vadd.f32 %v969_v12, %v939_v13  ;;  %v619_v20 = vmax.f32 %v553_v14, 0.0  ;;  %771 = vmatmul.mubr.f32.gmra.mrb[12].mxu1 %v617_v9 }
 0x194   : > { %v620_v21 = vmax.f32 %v555_v18, 0.0  ;;  %v558_v22 = vpop.f32.mrb[16].mxu0 }
 0x195   : > { %v971_v23 = vadd.f32 %v970_v19, %v940_v16  ;;  %835 = vst [vmem:[%s2128_s17 + $0x70] sm:$0xff] %v619_v20  ;;  %v941_v25 = vand.u32 2147483647, %v619_v20  ;;  %v559_v26 = vadd.f32 %v558_v22, %v2121_v54  ;;  %v560_v41 = vpop.f32.mrb[17].mxu0 }
 0x196   : > { %836 = vst [vmem:[%s2128_s17 + $0x78] sm:$0xff] %v620_v21  ;;  %v942_v42 = vand.u32 2147483647, %v620_v21  ;;  %v561_v43 = vadd.f32 %v560_v41, %v2123_v55  ;;  %775 = vmatprep.mubr.f32.mxu1 %v620_v21 }
 0x197   : > { %v972_v44 = vadd.f32 %v971_v23, %v941_v25  ;;  %v621_v45 = vmax.f32 %v559_v26, 0.0  ;;  %776 = vmatmul.mubr.f32.gmra.mrb[14].mxu1 %v619_v20 }
 0x198   : > { %v622_v46 = vmax.f32 %v561_v43, 0.0  ;;  %v564_v47 = vpop.f32.mrb[18].mxu0 }
 0x199   : > { %v973_v48 = vadd.f32 %v972_v44, %v942_v42  ;;  %837 = vst [vmem:[%s2128_s17 + $0x80] sm:$0xff] %v621_v45  ;;  %v943_v49 = vand.u32 2147483647, %v621_v45  ;;  %v565_v50 = vadd.f32 %v564_v47, %v2121_v54  ;;  %v566_v51 = vpop.f32.mrb[19].mxu0 }
 0x19a   : > { %838 = vst [vmem:[%s2128_s17 + $0x88] sm:$0xff] %v622_v46  ;;  %v944_v0 = vand.u32 2147483647, %v622_v46  ;;  %v567_v52 = vadd.f32 %v566_v51, %v2123_v55  ;;  %780 = vmatprep.mubr.f32.mxu1 %v622_v46 }
 0x19b   : > { %v974_v53 = vadd.f32 %v973_v48, %v943_v49  ;;  %v623_v56 = vmax.f32 %v565_v50, 0.0  ;;  %781 = vmatmul.mubr.f32.gmra.mrb[16].mxu1 %v621_v45 }
 0x19c   : > { %v624_v57 = vmax.f32 %v567_v52, 0.0  ;;  %v570_v58 = vpop.f32.mrb[20].mxu0 }
 0x19d   : > { %v975_v59 = vadd.f32 %v974_v53, %v944_v0  ;;  %839 = vst [vmem:[%s2128_s17 + $0x90] sm:$0xff] %v623_v56  ;;  %v945_v60 = vand.u32 2147483647, %v623_v56  ;;  %v571_v61 = vadd.f32 %v570_v58, %v2121_v54  ;;  %v572_v62 = vpop.f32.mrb[21].mxu0 }
 0x19e   : > { %840 = vst [vmem:[%s2128_s17 + $0x98] sm:$0xff] %v624_v57  ;;  %v946_v63 = vand.u32 2147483647, %v624_v57  ;;  %v573_v1 = vadd.f32 %v572_v62, %v2123_v55  ;;  %785 = vmatprep.mubr.f32.mxu1 %v624_v57 }
 0x19f   : > { %v976_v2 = vadd.f32 %v975_v59, %v945_v60  ;;  %v625_v3 = vmax.f32 %v571_v61, 0.0  ;;  %786 = vmatmul.mubr.f32.gmra.mrb[18].mxu1 %v623_v56 }
 0x1a0   : > { %v626_v4 = vmax.f32 %v573_v1, 0.0  ;;  %v576_v5 = vpop.f32.mrb[22].mxu0 }
 0x1a1   : > { %v977_v6 = vadd.f32 %v976_v2, %v946_v63  ;;  %841 = vst [vmem:[%s2128_s17 + $0xa0] sm:$0xff] %v625_v3  ;;  %v947_v7 = vand.u32 2147483647, %v625_v3  ;;  %v577_v8 = vadd.f32 %v576_v5, %v2121_v54  ;;  %v578_v9 = vpop.f32.mrb[23].mxu0 }
 0x1a2   : > { %842 = vst [vmem:[%s2128_s17 + $0xa8] sm:$0xff] %v626_v4  ;;  %v948_v10 = vand.u32 2147483647, %v626_v4  ;;  %v579_v11 = vadd.f32 %v578_v9, %v2123_v55  ;;  %790 = vmatprep.mubr.f32.mxu1 %v626_v4 }
 0x1a3   : > { %v978_v12 = vadd.f32 %v977_v6, %v947_v7  ;;  %v627_v13 = vmax.f32 %v577_v8, 0.0  ;;  %791 = vmatmul.mubr.f32.gmra.mrb[20].mxu1 %v625_v3 }
 0x1a4   : > { %v628_v14 = vmax.f32 %v579_v11, 0.0  ;;  %v582_v15 = vpop.f32.mrb[24].mxu0 }
 0x1a5   : > { %v979_v16 = vadd.f32 %v978_v12, %v948_v10  ;;  %843 = vst [vmem:[%s2128_s17 + $0xb0] sm:$0xff] %v627_v13  ;;  %v949_v18 = vand.u32 2147483647, %v627_v13  ;;  %v583_v19 = vadd.f32 %v582_v15, %v2121_v54  ;;  %v584_v20 = vpop.f32.mrb[25].mxu0 }
 0x1a6   : > { %844 = vst [vmem:[%s2128_s17 + $0xb8] sm:$0xff] %v628_v14  ;;  %v950_v21 = vand.u32 2147483647, %v628_v14  ;;  %v585_v22 = vadd.f32 %v584_v20, %v2123_v55  ;;  %795 = vmatprep.mubr.f32.mxu1 %v628_v14 }
 0x1a7   : > { %v980_v23 = vadd.f32 %v979_v16, %v949_v18  ;;  %v629_v25 = vmax.f32 %v583_v19, 0.0  ;;  %796 = vmatmul.mubr.f32.gmra.mrb[22].mxu1 %v627_v13 }
 0x1a8   : > { %v630_v26 = vmax.f32 %v585_v22, 0.0  ;;  %v588_v41 = vpop.f32.mrb[26].mxu0 }
 0x1a9   : > { %v981_v42 = vadd.f32 %v980_v23, %v950_v21  ;;  %845 = vst [vmem:[%s2128_s17 + $0xc0] sm:$0xff] %v629_v25  ;;  %v951_v43 = vand.u32 2147483647, %v629_v25  ;;  %v589_v44 = vadd.f32 %v588_v41, %v2121_v54  ;;  %v590_v45 = vpop.f32.mrb[27].mxu0 }
 0x1aa   : > { %846 = vst [vmem:[%s2128_s17 + $0xc8] sm:$0xff] %v630_v26  ;;  %v952_v46 = vand.u32 2147483647, %v630_v26  ;;  %v591_v47 = vadd.f32 %v590_v45, %v2123_v55  ;;  %800 = vmatprep.mubr.f32.mxu1 %v630_v26 }
 0x1ab   : > { %v982_v48 = vadd.f32 %v981_v42, %v951_v43  ;;  %v631_v49 = vmax.f32 %v589_v44, 0.0  ;;  %801 = vmatmul.mubr.f32.gmra.mrb[24].mxu1 %v629_v25 }
 0x1ac   : > { %v632_v50 = vmax.f32 %v591_v47, 0.0  ;;  %v594_v51 = vpop.f32.mrb[28].mxu0 }
 0x1ad   : > { %v983_v0 = vadd.f32 %v982_v48, %v952_v46  ;;  %847 = vst [vmem:[%s2128_s17 + $0xd0] sm:$0xff] %v631_v49  ;;  %v953_v52 = vand.u32 2147483647, %v631_v49  ;;  %v595_v53 = vadd.f32 %v594_v51, %v2121_v54  ;;  %v596_v56 = vpop.f32.mrb[29].mxu0 }
 0x1ae   : > { %848 = vst [vmem:[%s2128_s17 + $0xd8] sm:$0xff] %v632_v50  ;;  %v954_v57 = vand.u32 2147483647, %v632_v50  ;;  %v597_v58 = vadd.f32 %v596_v56, %v2123_v55  ;;  %805 = vmatprep.mubr.f32.mxu1 %v632_v50 }
 0x1af   : > { %v984_v59 = vadd.f32 %v983_v0, %v953_v52  ;;  %v633_v60 = vmax.f32 %v595_v53, 0.0  ;;  %806 = vmatmul.mubr.f32.gmra.mrb[26].mxu1 %v631_v49 }
 0x1b0   : > { %v634_v61 = vmax.f32 %v597_v58, 0.0  ;;  %v600_v62 = vpop.f32.mrb[30].mxu0 }
 0x1b1   : > { %v985_v63 = vadd.f32 %v984_v59, %v954_v57  ;;  %849 = vst [vmem:[%s2128_s17 + $0xe0] sm:$0xff] %v633_v60  ;;  %v955_v1 = vand.u32 2147483647, %v633_v60  ;;  %v601_v2 = vadd.f32 %v600_v62, %v2121_v54  ;;  %v602_v3 = vpop.f32.mrb[31].mxu0 }
 0x1b2   : > { %850 = vst [vmem:[%s2128_s17 + $0xe8] sm:$0xff] %v634_v61  ;;  %v956_v4 = vand.u32 2147483647, %v634_v61  ;;  %v603_v5 = vadd.f32 %v602_v3, %v2123_v55  ;;  %810 = vmatprep.mubr.f32.mxu1 %v634_v61  ;;  %v2197_v55 = vld [vmem:[%s2411_s4] ss:$0 sm:$0xff] }
 0x1b3   : > { %v635_v6 = vmax.f32 %v601_v2, 0.0  ;;  %811 = vmatmul.mubr.f32.gmra.mrb[28].mxu1 %v633_v60  ;;  %v986_v7 = vadd.f32 %v985_v63, %v955_v1 }
 0x1b4   : > { %v636_v8 = vmax.f32 %v603_v5, 0.0 }
 0x1b5   : > { %851 = vst [vmem:[%s2128_s17 + $0xf0] sm:$0xff] %v635_v6  ;;  %v957_v9 = vand.u32 2147483647, %v635_v6  ;;  %v987_v10 = vadd.f32 %v986_v7, %v956_v4 }
 0x1b6   : > { %852 = vst [vmem:[%s2128_s17 + $0xf8] sm:$0xff] %v636_v8  ;;  %815 = vmatprep.mubr.f32.mxu1 %v636_v8  ;;  %v958_v11 = vand.u32 2147483647, %v636_v8 }
 0x1b7   : > { %816 = vmatmul.mubr.f32.gmra.mrb[30].mxu1 %v635_v6  ;;  %v988_v12 = vadd.f32 %v987_v10, %v957_v9 }
 0x1b9   : > { %v2192_v54 = vadd.f32 %v988_v12, %v958_v11 }
 0x24e   : > { %v1324_v13 = vpop.f32.mrb[0].mxu1 }
 0x24f   : > { %v1325_v14 = vpop.f32.mrb[1].mxu1 }
 0x250   : > { %v1326_v15 = vadd.f32 %v1325_v14, %v1324_v13 }
 0x252   : > { %v743_v16 = vadd.f32 %v1326_v15, %v2197_v55  ;;  %v1327_v18 = vpop.f32.mrb[2].mxu1 }
 0x253   : > { %v1328_v19 = vpop.f32.mrb[3].mxu1 }
 0x254   : > { %853 = vst [vmem:[%s2202_s15] sm:$0xff] %v743_v16  ;;  %v1329_v20 = vadd.f32 %v1328_v19, %v1327_v18  ;;  %v869_v21 = vsub.f32 %v743_v16, %v2040_v17 }
 0x256   : > { %v748_v22 = vadd.f32 %v1329_v20, %v2197_v55  ;;  %v1330_v23 = vpop.f32.mrb[4].mxu1  ;;  %v885_v42 = vmul.f32 %v869_v21, %v869_v21 }
 0x257   : > { %v1331_v25 = vpop.f32.mrb[5].mxu1 }
 0x258   : > { %854 = vst [vmem:[%s2202_s15 + $0x8] sm:$0xff] %v748_v22  ;;  %v870_v26 = vsub.f32 %v748_v22, %v2045_v24  ;;  %v1332_v41 = vadd.f32 %v1331_v25, %v1330_v23 }
 0x25a   : > { %v886_v43 = vmul.f32 %v870_v26, %v870_v26  ;;  %v753_v44 = vadd.f32 %v1332_v41, %v2197_v55  ;;  %v1333_v45 = vpop.f32.mrb[6].mxu1 }
 0x25b   : > { %v1334_v46 = vpop.f32.mrb[7].mxu1 }
 0x25c   : > { %v901_v47 = vadd.f32 %v886_v43, %v885_v42  ;;  %855 = vst [vmem:[%s2202_s15 + $0x10] sm:$0xff] %v753_v44  ;;  %v871_v17 = vsub.f32 %v753_v44, %v2050_v27  ;;  %v1335_v48 = vadd.f32 %v1334_v46, %v1333_v45 }
 0x25e   : > { %v887_v49 = vmul.f32 %v871_v17, %v871_v17  ;;  %v758_v50 = vadd.f32 %v1335_v48, %v2197_v55  ;;  %v1336_v51 = vpop.f32.mrb[8].mxu1 }
 0x25f   : > { %v1337_v0 = vpop.f32.mrb[9].mxu1 }
 0x260   : > { %v902_v24 = vadd.f32 %v901_v47, %v887_v49  ;;  %856 = vst [vmem:[%s2202_s15 + $0x18] sm:$0xff] %v758_v50  ;;  %v872_v52 = vsub.f32 %v758_v50, %v2055_v28  ;;  %v1338_v53 = vadd.f32 %v1337_v0, %v1336_v51 }
 0x262   : > { %v888_v56 = vmul.f32 %v872_v52, %v872_v52  ;;  %v763_v57 = vadd.f32 %v1338_v53, %v2197_v55  ;;  %v1339_v58 = vpop.f32.mrb[10].mxu1 }
 0x263   : > { %v1340_v59 = vpop.f32.mrb[11].mxu1 }
 0x264   : > { %v903_v60 = vadd.f32 %v902_v24, %v888_v56  ;;  %857 = vst [vmem:[%s2202_s15 + $0x20] sm:$0xff] %v763_v57  ;;  %v873_v27 = vsub.f32 %v763_v57, %v2060_v29  ;;  %v1341_v61 = vadd.f32 %v1340_v59, %v1339_v58 }
 0x266   : > { %v889_v62 = vmul.f32 %v873_v27, %v873_v27  ;;  %v768_v63 = vadd.f32 %v1341_v61, %v2197_v55  ;;  %v1342_v1 = vpop.f32.mrb[12].mxu1 }
 0x267   : > { %v1343_v2 = vpop.f32.mrb[13].mxu1 }
 0x268   : > { %v904_v3 = vadd.f32 %v903_v60, %v889_v62  ;;  %858 = vst [vmem:[%s2202_s15 + $0x28] sm:$0xff] %v768_v63  ;;  %v874_v28 = vsub.f32 %v768_v63, %v2065_v30  ;;  %v1344_v4 = vadd.f32 %v1343_v2, %v1342_v1 }
 0x26a   : > { %v890_v5 = vmul.f32 %v874_v28, %v874_v28  ;;  %v773_v6 = vadd.f32 %v1344_v4, %v2197_v55  ;;  %v1345_v7 = vpop.f32.mrb[14].mxu1 }
 0x26b   : > { %v1346_v8 = vpop.f32.mrb[15].mxu1 }
 0x26c   : > { %v905_v9 = vadd.f32 %v904_v3, %v890_v5  ;;  %859 = vst [vmem:[%s2202_s15 + $0x30] sm:$0xff] %v773_v6  ;;  %v875_v29 = vsub.f32 %v773_v6, %v2070_v31  ;;  %v1347_v10 = vadd.f32 %v1346_v8, %v1345_v7 }
 0x26e   : > { %v891_v11 = vmul.f32 %v875_v29, %v875_v29  ;;  %v778_v12 = vadd.f32 %v1347_v10, %v2197_v55  ;;  %v1348_v13 = vpop.f32.mrb[16].mxu1 }
 0x26f   : > { %v1349_v14 = vpop.f32.mrb[17].mxu1 }
 0x270   : > { %v906_v15 = vadd.f32 %v905_v9, %v891_v11  ;;  %860 = vst [vmem:[%s2202_s15 + $0x38] sm:$0xff] %v778_v12  ;;  %v876_v30 = vsub.f32 %v778_v12, %v2075_v32  ;;  %v1350_v16 = vadd.f32 %v1349_v14, %v1348_v13 }
 0x272   : > { %v892_v18 = vmul.f32 %v876_v30, %v876_v30  ;;  %v783_v19 = vadd.f32 %v1350_v16, %v2197_v55  ;;  %v1351_v20 = vpop.f32.mrb[18].mxu1 }
 0x273   : > { %v1352_v21 = vpop.f32.mrb[19].mxu1 }
 0x274   : > { %v907_v22 = vadd.f32 %v906_v15, %v892_v18  ;;  %861 = vst [vmem:[%s2202_s15 + $0x40] sm:$0xff] %v783_v19  ;;  %v877_v31 = vsub.f32 %v783_v19, %v2080_v33  ;;  %v1353_v23 = vadd.f32 %v1352_v21, %v1351_v20 }
 0x276   : > { %v893_v25 = vmul.f32 %v877_v31, %v877_v31  ;;  %v788_v26 = vadd.f32 %v1353_v23, %v2197_v55  ;;  %v1354_v41 = vpop.f32.mrb[20].mxu1 }
 0x277   : > { %v1355_v42 = vpop.f32.mrb[21].mxu1 }
 0x278   : > { %v908_v43 = vadd.f32 %v907_v22, %v893_v25  ;;  %862 = vst [vmem:[%s2202_s15 + $0x48] sm:$0xff] %v788_v26  ;;  %v878_v32 = vsub.f32 %v788_v26, %v2085_v34  ;;  %v1356_v44 = vadd.f32 %v1355_v42, %v1354_v41 }
 0x27a   : > { %v894_v45 = vmul.f32 %v878_v32, %v878_v32  ;;  %v793_v46 = vadd.f32 %v1356_v44, %v2197_v55  ;;  %v1357_v47 = vpop.f32.mrb[22].mxu1 }
 0x27b   : > { %v1358_v17 = vpop.f32.mrb[23].mxu1 }
 0x27c   : > { %v909_v48 = vadd.f32 %v908_v43, %v894_v45  ;;  %863 = vst [vmem:[%s2202_s15 + $0x50] sm:$0xff] %v793_v46  ;;  %v879_v33 = vsub.f32 %v793_v46, %v2090_v35  ;;  %v1359_v49 = vadd.f32 %v1358_v17, %v1357_v47 }
 0x27e   : > { %v895_v50 = vmul.f32 %v879_v33, %v879_v33  ;;  %v798_v51 = vadd.f32 %v1359_v49, %v2197_v55  ;;  %v1360_v0 = vpop.f32.mrb[24].mxu1 }
 0x27f   : > { %v1361_v24 = vpop.f32.mrb[25].mxu1 }
 0x280   : > { %v910_v52 = vadd.f32 %v909_v48, %v895_v50  ;;  %864 = vst [vmem:[%s2202_s15 + $0x58] sm:$0xff] %v798_v51  ;;  %v880_v34 = vsub.f32 %v798_v51, %v2095_v36  ;;  %v1362_v53 = vadd.f32 %v1361_v24, %v1360_v0 }
 0x282   : > { %v896_v56 = vmul.f32 %v880_v34, %v880_v34  ;;  %v803_v57 = vadd.f32 %v1362_v53, %v2197_v55  ;;  %v1363_v58 = vpop.f32.mrb[26].mxu1 }
 0x283   : > { %v1364_v59 = vpop.f32.mrb[27].mxu1 }
 0x284   : > { %v911_v60 = vadd.f32 %v910_v52, %v896_v56  ;;  %865 = vst [vmem:[%s2202_s15 + $0x60] sm:$0xff] %v803_v57  ;;  %v881_v35 = vsub.f32 %v803_v57, %v2100_v37  ;;  %v1365_v27 = vadd.f32 %v1364_v59, %v1363_v58 }
 0x286   : > { %v897_v61 = vmul.f32 %v881_v35, %v881_v35  ;;  %v808_v62 = vadd.f32 %v1365_v27, %v2197_v55  ;;  %v1366_v63 = vpop.f32.mrb[28].mxu1 }
 0x287   : > { %v1367_v1 = vpop.f32.mrb[29].mxu1 }
 0x288   : > { %866 = vst [vmem:[%s2202_s15 + $0x68] sm:$0xff] %v808_v62  ;;  %v882_v36 = vsub.f32 %v808_v62, %v2105_v38  ;;  %v1368_v2 = vadd.f32 %v1367_v1, %v1366_v63  ;;  %v912_v3 = vadd.f32 %v911_v60, %v897_v61 }
 0x28a   : > { %v898_v28 = vmul.f32 %v882_v36, %v882_v36  ;;  %v813_v4 = vadd.f32 %v1368_v2, %v2197_v55  ;;  %v1369_v5 = vpop.f32.mrb[30].mxu1 }
 0x28b   : > { %v1370_v6 = vpop.f32.mrb[31].mxu1 }
 0x28c   : > { %867 = vst [vmem:[%s2202_s15 + $0x70] sm:$0xff] %v813_v4  ;;  %v1371_v37 = vadd.f32 %v1370_v6, %v1369_v5  ;;  %v883_v7 = vsub.f32 %v813_v4, %v2110_v39  ;;  %v913_v8 = vadd.f32 %v912_v3, %v898_v28 }
 0x28e   : > { %v818_v9 = vadd.f32 %v1371_v37, %v2197_v55  ;;  %v899_v29 = vmul.f32 %v883_v7, %v883_v7 }
 0x290   : > { %868 = vst [vmem:[%s2202_s15 + $0x78] sm:$0xff] %v818_v9  ;;  %v884_v38 = vsub.f32 %v818_v9, %v2115_v40  ;;  %v914_v10 = vadd.f32 %v913_v8, %v899_v29 }
 0x292   : > { %v900_v11 = vmul.f32 %v884_v38, %v884_v38 }
 0x294   : > { %v915_v12 = vadd.f32 %v914_v10, %v900_v11 }
 0x296   : > { %916 = vadd.xlane.f32.xlu0 %v915_v12 }
 0x29a   : > { %990 = vadd.xlane.f32.xlu0 %v2192_v54 }
 0x29b   : > { %1630 = shalt.err (!%p1627_p2)
}
 0x29c   : > { %s1631_s17 = scalar_lea.hbm %s2257_s22, 4096  ;;  %s1635_s24 = scalar_lea.hbm %s2413_s6, 8192 }
 0x29d   : > { %p1632_p13 = scmp.ne.s32.totalorder %s2257_s22, %s1631_s17  ;;  %p1636_p4 = scmp.lt.u32.totalorder %s2257_s22, %s2413_s6 }
 0x29e   : > { %p1637_p7 = scmp.lt.u32.totalorder %s1635_s24, %s1631_s17  ;;  %p1639_p11 = scmp.lt.u32.totalorder %s1631_s17, %s2257_s22 }
 0x29f   : > { %p1633_p6 = pnand %p1632_p13, %p2440_p0 }
 0x2a0   : > { %p1638_p8 = por %p1637_p7, %p1636_p4 }
 0x2a1   : > { %p1634_p10 = pneg %p1633_p6 }
 0x2a2   : > { %p1640_p1 = por %p1639_p11, %p1638_p8 }
 0x2a4   : > { %p1641_p3 = pnand %p1640_p1, %p1634_p10 }
 0x2a6   : > { %1644 = shalt.err (!%p1641_p3)
}
 0x2a7   : > { %s1790_s0 = smov 256   ;;  %s1791_s10 = smov 16  }
 0x2a8   : > { %1451 = dma.vmem_to_hbm [thread:$0]  (%p2440_p0), %s2260_s11, 4096, %s2257_s22, %s2262_s13, %s1790_s0, %s1790_s0, %s1791_s10  }
 0x2a9   : > { %s1289_s18 = sshll.u32 %s1863_s9, 11  ;;  %s1030_s24 = sshll.u32 %s2202_s15, 4  ;;  %s2293_s24 = int_to_ptr.vmem [resolvable:$true] %s1030_s24 }
 0x2aa   : > { %s2290_s17 = scalar_lea.hbm %s2412_s5, %s1289_s18  ;;  %s1002_s25 = scalar_lea.sflag [#allocation4], %s2022_s19 }
 0x2ab   : > { %s1645_s21 = scalar_lea.vmem %s2293_s24, 2048  ;;  %s1792_s1 = smov [#allocation8]  }
 0x2ac   : > { %p1646_p5 = scmp.ne.s32.totalorder %s2293_s24, %s1645_s21  ;;  %s1649_s22 = sshll.u32 %s1792_s1, 4  ;;  %s1650_s22 = int_to_ptr.vmem [resolvable:$false] %s1649_s22 }
 0x2ad   : > { %s1651_s11 = scalar_lea.vmem %s1650_s22, 4096  ;;  %p1652_p2 = scmp.lt.s32.totalorder %s2293_s24, %s1650_s22 }
 0x2ae   : > { %p1647_p9 = pnand %p1646_p5, %p2440_p0  ;;  %p1653_p13 = scmp.lt.s32.totalorder %s1651_s11, %s1645_s21 }
 0x2b0   : > { %p1648_p12 = pneg %p1647_p9  ;;  %p1654_p6 = por %p1653_p13, %p1652_p2 }
 0x2b2   : > { %p1655_p10 = pnand %p1654_p6, %p1648_p12 }
 0x2b4   : > { %1658 = shalt.err (!%p1655_p10)
}
 0x2b5   : > { %s1659_s15 = scalar_lea.hbm %s2290_s17, 2048  ;;  %s1663_s1 = scalar_lea.hbm %s2412_s5, 4096 }
 0x2b6   : > { %p1660_p4 = scmp.ne.s32.totalorder %s2290_s17, %s1659_s15  ;;  %p1664_p11 = scmp.lt.u32.totalorder %s2290_s17, %s2412_s5 }
 0x2b7   : > { %p1665_p1 = scmp.lt.u32.totalorder %s1663_s1, %s1659_s15  ;;  %p1667_p5 = scmp.lt.u32.totalorder %s1659_s15, %s2290_s17 }
 0x2b8   : > { %p1661_p7 = pnand %p1660_p4, %p2440_p0 }
 0x2b9   : > { %p1666_p3 = por %p1665_p1, %p1664_p11 }
 0x2ba   : > { %p1662_p8 = pneg %p1661_p7 }
 0x2bb   : > { %p1668_p9 = por %p1667_p5, %p1666_p3 }
 0x2bd   : > { %p1669_p12 = pnand %p1668_p9, %p1662_p8 }
 0x2bf   : > { %1672 = shalt.err (!%p1669_p12)
}
 0x2c0   : > { %s1793_s26 = smov 128   ;;  %s1794_s21 = smov 8  }
 0x2c1   : > { %1450 = dma.vmem_to_hbm [thread:$0]  (%p2440_p0), %s2293_s24, 2048, %s2290_s17, %s1002_s25, %s1793_s26, %s1793_s26, %s1794_s21  }
 0x2c2   : > { %s1272_s17 = sshll.u32 %s2022_s19, 3  ;;  %s1284_s22 = sshll.u32 %s1863_s9, 7 }
 0x2c3   : > { %s373_s24 = scalar_lea.vmem [#allocation11], %s1272_s17  ;;  %s2323_s11 = scalar_lea.vmem [#allocation12], %s1272_s17 }
 0x2c4   : > { %s1063_s25 = sshll.u32 %s373_s24, 4  ;;  %s1076_s15 = sshll.u32 %s2323_s11, 4  ;;  %s2321_s25 = int_to_ptr.vmem [resolvable:$true] %s1063_s25  ;;  %s2333_s15 = int_to_ptr.vmem [resolvable:$true] %s1076_s15 }
 0x2c5   : > { %s2331_s18 = scalar_lea.hbm %s2414_s7, %s1284_s22  ;;  %s1673_s14 = scalar_lea.vmem %s2321_s25, 128 }
 0x2c6   : > { %p1674_p2 = scmp.ne.s32.totalorder %s2321_s25, %s1673_s14  ;;  %s1795_s26 = smov [#allocation11]  }
 0x2c7   : > { %s1677_s21 = sshll.u32 %s1795_s26, 4  ;;  %s1678_s21 = int_to_ptr.vmem [resolvable:$false] %s1677_s21 }
 0x2c8   : > { %p1675_p13 = pnand %p1674_p2, %p2440_p0  ;;  %s1679_s17 = scalar_lea.vmem %s1678_s21, 256 }
 0x2c9   : > { %p1680_p10 = scmp.lt.s32.totalorder %s2321_s25, %s1678_s21  ;;  %p1681_p4 = scmp.lt.s32.totalorder %s1679_s17, %s1673_s14 }
 0x2ca   : > { %p1676_p6 = pneg %p1675_p13 }
 0x2cb   : > { %p1682_p7 = por %p1681_p4, %p1680_p10 }
 0x2cd   : > { %p1683_p8 = pnand %p1682_p7, %p1676_p6 }
 0x323   : > { %v917_v39 = vpop.xlane.xlu0 %916 }
 0x324   : > { %v918_v40 = vrot.slane %v917_v39, 4 }
 0x326   : > { %v919_v54 = vadd.f32 %v918_v40, %v917_v39 }
 0x327   : > { %v991_v55 = vpop.xlane.xlu0 %990 }
 0x328   : > { %v920_v13 = vrot.slane %v919_v54, 2  ;;  %v992_v14 = vrot.slane %v991_v55, 4 }
 0x32a   : > { %v993_v15 = vadd.f32 %v992_v14, %v991_v55  ;;  %v921_v30 = vadd.f32 %v920_v13, %v919_v54 }
 0x32c   : > { %v994_v16 = vrot.slane %v993_v15, 2  ;;  %v922_v18 = vrot.slane %v921_v30, 1 }
 0x32e   : > { %v995_v19 = vadd.f32 %v994_v16, %v993_v15  ;;  %v923_v20 = vadd.f32 %v922_v18, %v921_v30 }
 0x330   : > { %1436 = vpush %v923_v20  ;;  %v996_v21 = vrot.slane %v995_v19, 1 }
 0x332   : > { %v997_v22 = vadd.f32 %v996_v21, %v995_v19 }
 0x334   : > { %1438 = vpush %v997_v22 }
 0x361   : > { %s1437_s0 = spop %1436 }
 0x362   : > { %v925_v31 = vstv %s1437_s0 }
 0x363   : > { %926 = vst [vmem:[%s373_s24] sm:$0xff] %v925_v31 }
 0x364   : > { %1686 = shalt.err (!%p1683_p8)
}
 0x365   : > { %s1687_s24 = scalar_lea.hbm %s2331_s18, 128  ;;  %s1691_s1 = scalar_lea.hbm %s2414_s7, 256 }
 0x366   : > { %p1688_p11 = scmp.ne.s32.totalorder %s2331_s18, %s1687_s24  ;;  %p1692_p5 = scmp.lt.u32.totalorder %s2331_s18, %s2414_s7 }
 0x367   : > { %p1693_p9 = scmp.lt.u32.totalorder %s1691_s1, %s1687_s24  ;;  %p1695_p2 = scmp.lt.u32.totalorder %s1687_s24, %s2331_s18 }
 0x368   : > { %p1689_p1 = pnand %p1688_p11, %p2440_p0 }
 0x369   : > { %p1694_p12 = por %p1693_p9, %p1692_p5 }
 0x36a   : > { %p1690_p3 = pneg %p1689_p1 }
 0x36b   : > { %p1696_p13 = por %p1695_p2, %p1694_p12 }
 0x36d   : > { %p1697_p6 = pnand %p1696_p13, %p1690_p3 }
 0x36f   : > { %1700 = shalt.err (!%p1697_p6)
}
 0x370   : > { %1452 = dma.vmem_to_hbm [thread:$0]  (%p2440_p0), %s2321_s25, 128, %s2331_s18, %s2262_s13  }
 0x371   : > { %s1439_s14 = spop %1438  ;;  %s2362_s0 = scalar_lea.hbm %s2415_s8, %s1284_s22 }
 0x372   : > { %v999_v23 = vstv %s1439_s14  ;;  %s1017_s10 = scalar_lea.sflag [#allocation13], %s2022_s19  ;;  %s1701_s1 = scalar_lea.vmem %s2333_s15, 128 }
 0x373   : > { %1000 = vst [vmem:[%s2323_s11] sm:$0xff] %v999_v23  ;;  %p1702_p10 = scmp.ne.s32.totalorder %s2333_s15, %s1701_s1  ;;  %s1796_s26 = smov [#allocation12]  }
 0x374   : > { %s1705_s21 = sshll.u32 %s1796_s26, 4  ;;  %s1706_s21 = int_to_ptr.vmem [resolvable:$false] %s1705_s21 }
 0x375   : > { %p1703_p4 = pnand %p1702_p10, %p2440_p0  ;;  %s1707_s2 = scalar_lea.vmem %s1706_s21, 256 }
 0x376   : > { %p1708_p8 = scmp.lt.s32.totalorder %s2333_s15, %s1706_s21  ;;  %p1709_p11 = scmp.lt.s32.totalorder %s1707_s2, %s1701_s1 }
 0x377   : > { %p1704_p7 = pneg %p1703_p4 }
 0x378   : > { %p1710_p1 = por %p1709_p11, %p1708_p8 }
 0x37a   : > { %p1711_p3 = pnand %p1710_p1, %p1704_p7 }
 0x37c   : > { %1714 = shalt.err (!%p1711_p3)
}
 0x37d   : > { %s1715_s9 = scalar_lea.hbm %s2362_s0, 128  ;;  %s1719_s25 = scalar_lea.hbm %s2415_s8, 256 }
 0x37e   : > { %p1716_p5 = scmp.ne.s32.totalorder %s2362_s0, %s1715_s9  ;;  %p1720_p2 = scmp.lt.u32.totalorder %s2362_s0, %s2415_s8 }
 0x37f   : > { %p1721_p13 = scmp.lt.u32.totalorder %s1719_s25, %s1715_s9  ;;  %p1723_p10 = scmp.lt.u32.totalorder %s1715_s9, %s2362_s0 }
 0x380   : > { %p1717_p9 = pnand %p1716_p5, %p2440_p0 }
 0x381   : > { %p1722_p6 = por %p1721_p13, %p1720_p2 }
 0x382   : > { %p1718_p12 = pneg %p1717_p9 }
 0x383   : > { %p1724_p4 = por %p1723_p10, %p1722_p6 }
 0x385   : > { %p1725_p7 = pnand %p1724_p4, %p1718_p12 }
 0x387   : > { %1728 = shalt.err (!%p1725_p7)
}
 0x388   : > { %1453 = dma.vmem_to_hbm [thread:$0]  (%p2440_p0), %s2333_s15, 128, %s2362_s0, %s1017_s10  }
 0x389 PF: > { %s1088_s2 = sand.u32 1, %s1767_s27   ;;  %p2441_p8 = scmp.ne.s32.totalorder %s2426_s12, 0 }
 0x38a   : > { %p2442_p11 = scmp.ge.s32.totalorder %s1779_s30, 2  ;;  %s1089_s18 = scalar_lea.sflag [#allocation4], %s1088_s2 }
 0x38c   : > { %p1470_p1 = pnand %p2442_p11, %p2441_p8 }
 0x38e   : > { %1754 = dma.done.wait (!%p1470_p1), %s1089_s18, 2048  }
 0x38f   : > { %1756 = vsyncadd (!%p1470_p1), %s1089_s18, 4294965248  ;;  %s2443_s14 = sadd.s32 4294967294, %s1779_s30  }
 0x390   : > { %s1097_s17 = sand.u32 1, %s2443_s14  }
 0x391   : > { %s1098_s24 = scalar_lea.sflag [#allocation10], %s1097_s17 }
 0x392   : > { %1758 = dma.done.wait (!%p1470_p1), %s1098_s24, 4224  }
 0x393   : > { %1760 = vsyncadd (!%p1470_p1), %s1098_s24, 4294963072  ;;  %s1116_s16 = scalar_lea.sflag [#allocation13], %s1088_s2 }
 0x394   : > { %1762 = dma.done.wait (!%p1470_p1), %s1116_s16, 128  }
 0x395   : > { %1764 = vsyncadd (!%p1470_p1), %s1116_s16, 4294967168  ;;  %p29_p0 = scmp.ge.s32.totalorder %s1957_s20, 4   ;;  %s2444_s27 = smov %s1771_s28 }
 0x396   : > { %s2445_s28 = smov %s1775_s29  ;;  %s2446_s29 = smov %s1966_s23 }
 0x397   : > { %s2447_s30 = smov %s1957_s20  ;;  %31 = sbr.rel (!%p29_p0) target bundleno = 14 (0xe), region = 142 }
 0x39e   :  { %1121 = vsyncpa [#allocation3], 1 }
 0x39f   :  { %1123 = vsyncpa [#allocation3 + $0x1], 1 }
 0x3a0   :  { %1124 = vsyncpa [#allocation6], 1 }
 0x3a1   :  { %1125 = vsyncpa [#allocation4], 1 }
 0x3a2   :  { %1127 = vsyncpa [#allocation4 + $0x1], 1 }
 0x3a3   :  { %1128 = vsyncpa [#allocation10], 1 }
 0x3a4   :  { %1130 = vsyncpa [#allocation10 + $0x1], 1 }
 0x3a5   :  { %1131 = vsyncpa [#allocation13], 1 }
 0x3a6   :  { %1133 = vsyncpa [#allocation13 + $0x1], 1 }

</bundles_post_ra>
